<compile_context>
chip_gen: v7x
topology: tpu7x:2x2x1
jax: 0.10.0
libtpu: 0.0.40
codegen_flags: <defaults>
</compile_context>

<pallas_src>
import numpy as np
import jax
import jax.numpy as jnp
from jax.experimental import pallas as pl
from jax.experimental.pallas import tpu as pltpu

# ----- network geometry (fixed by the PyTorch module + 28x28 input) -----
_H = 28                  # input spatial size
_K = 5                   # conv kernel size
_C1 = 10                 # conv1 out channels
_H1 = _H - _K + 1        # 24  (conv1 output spatial)
_P1 = _H1 // 2           # 12  (after 2x2 pool)
_C2 = 20                 # conv2 out channels
_H2 = _P1 - _K + 1       # 8   (conv2 output spatial)
_P2 = _H2 // 2           # 4   (after 2x2 pool)
_FC1 = 50
_NCLS = 10
_LANE = 128              # vreg lane width; even/odd conv halves live in lanes [0,128)/[128,256)


# ---------------------------------------------------------------------------
# Fused kernel (single grid step, whole batch). Layouts:
#   conv1 acc a1:  (24, 256)  lanes [0:120)  = even cols (oc*12+j), [128:248) = odd cols
#   pooled p1:     (12, 128)  lanes [0:120)  = oc*12 + w'   (staged in VMEM scratch)
#   conv2 acc a2:  (8,  256)  lanes [0:80)   = even cols (oc*4+j),  [128:208) = odd cols
#   flat:          (N, 512)   lanes r*128 + oc*4 + j  == torch view(-1,320) order (zero-padded)
# ---------------------------------------------------------------------------
def _make_fused_kernel(N):
    bf16 = jnp.bfloat16

    def dot(a, b):
        return jnp.dot(a, b, preferred_element_type=jnp.float32)

    def kernel(x_ref, b1_ref, bias1_ref, re1_ref, ro1_ref,
               b2_ref, bias2_ref, g_ref, bfc1_ref, wfc2_ref, bfc2_ref,
               o_ref, p1s_ref, flat_ref):
        for n in range(N):
            # ---- conv1 (valid 5x5, 1 -> 10): banded matmuls with the even/odd column
            #      pool folded into the weights and packed into one 256-lane RHS per di.
            a1 = bias1_ref[...]                                        # (1, 256) f32
            for di in range(_K):
                lhs = x_ref[n, di:di + _H1, :].astype(bf16)            # (24, 28)
                a1 = a1 + dot(lhs, b1_ref[di])                         # (24, 256)
            mc1 = jnp.maximum(a1[:, :_LANE], a1[:, _LANE:]).astype(bf16)   # column pool

            # ---- 2x2 row pool (0/1 selection matmuls) + ReLU, staged in VMEM so conv2
            #      reads plain ref slices.
            p1 = jnp.maximum(dot(re1_ref[...], mc1), dot(ro1_ref[...], mc1))  # (12, 128)
            p1s_ref[...] = jnp.maximum(p1, 0.0)

            # ---- conv2 (valid 5x5, 10 -> 20): same folded even/odd 256-lane packing.
            a2 = bias2_ref[...]                                        # (1, 256) f32
            for di in range(_K):
                lhs = p1s_ref[di:di + _H2, :].astype(bf16)             # (8, 128)
                a2 = a2 + dot(lhs, b2_ref[di])                         # (8, 256)
            mc2 = jnp.maximum(a2[:, :_LANE], a2[:, _LANE:])            # column pool (8, 128)

            # ---- 2x2 row pool + ReLU + torch view(-1, 320) flatten: each pooled row goes
            #      into its own 128-lane block of the batched flat activation.
            for r in range(_P2):
                row = jnp.maximum(mc2[2 * r:2 * r + 1, :], mc2[2 * r + 1:2 * r + 2, :])
                flat_ref[n:n + 1, r * _LANE:(r + 1) * _LANE] = jnp.maximum(row, 0.0)

        # ---- fc1 + ReLU + fc2 + log_softmax for the whole batch in one matmul each ----
        flat = flat_ref[...].astype(bf16)                              # (N, 512)
        h = jnp.maximum(dot(flat, g_ref[...]) + bfc1_ref[...], 0.0)    # (N, 50)
        z = dot(h.astype(bf16), wfc2_ref[...]) + bfc2_ref[...]         # (N, 10)
        m = jnp.max(z, axis=-1, keepdims=True)
        s = z - m
        o_ref[...] = s - jnp.log(jnp.sum(jnp.exp(s), axis=-1, keepdims=True))

    return kernel


# ---------------------------------------------------------------------------
# One-time parameter preparation (outside the hot path): banded conv weights with the
# column pool folded in + 256-lane even/odd packing, row-pool selectors, regrouped fc1.
# Matmul operands are stored as bf16; biases stay f32 (added to f32 accumulators).
# ---------------------------------------------------------------------------
def prepare_constants(raw):
    w1 = np.asarray(raw["conv1_w"], np.float32)   # (10, 1, 5, 5)
    b1 = np.asarray(raw["conv1_b"], np.float32)
    w2 = np.asarray(raw["conv2_w"], np.float32)   # (20, 10, 5, 5)
    b2 = np.asarray(raw["conv2_b"], np.float32)
    fc1w = np.asarray(raw["fc1_w"], np.float32)   # (50, 320)
    fc1b = np.asarray(raw["fc1_b"], np.float32)
    fc2w = np.asarray(raw["fc2_w"], np.float32)   # (10, 50)
    fc2b = np.asarray(raw["fc2_b"], np.float32)

    # conv1: even output col ow=2j in lanes [0:120), odd ow=2j+1 in lanes [128:248)
    B1eo = np.zeros((_K, _H, 2 * _LANE), np.float32)
    for di in range(_K):
        for oc in range(_C1):
            for j in range(_P1):
                for dj in range(_K):
                    B1eo[di, 2 * j + dj, oc * _P1 + j] = w1[oc, 0, di, dj]
                    B1eo[di, 2 * j + 1 + dj, _LANE + oc * _P1 + j] = w1[oc, 0, di, dj]
    bias1 = np.zeros((1, 2 * _LANE), np.float32)
    bias1[0, :_C1 * _P1] = np.repeat(b1, _P1)
    bias1[0, _LANE:_LANE + _C1 * _P1] = np.repeat(b1, _P1)

    # row-pool selectors for pool1
    Re1 = np.zeros((_P1, _H1), np.float32)
    Ro1 = np.zeros((_P1, _H1), np.float32)
    for i in range(_P1):
        Re1[i, 2 * i] = 1.0
        Ro1[i, 2 * i + 1] = 1.0

    # conv2: p1 lanes are c*12 + w' (zero-padded to 128); even col ow=2j -> lanes [0:80),
    # odd ow=2j+1 -> lanes [128:208)
    B2eo = np.zeros((_K, _LANE, 2 * _LANE), np.float32)
    for di in range(_K):
        for oc in range(_C2):
            for c in range(_C1):
                for j in range(_P2):
                    for dj in range(_K):
                        B2eo[di, c * _P1 + 2 * j + dj, oc * _P2 + j] = w2[oc, c, di, dj]
                        B2eo[di, c * _P1 + 2 * j + 1 + dj, _LANE + oc * _P2 + j] = w2[oc, c, di, dj]
    bias2 = np.zeros((1, 2 * _LANE), np.float32)
    bias2[0, :_C2 * _P2] = np.repeat(b2, _P2)
    bias2[0, _LANE:_LANE + _C2 * _P2] = np.repeat(b2, _P2)

    # fc1 regrouped onto the zero-padded flat layout: flat lane r*128 + oc*4 + j
    # corresponds to torch flatten index oc*16 + r*4 + j.
    Gflat = np.zeros((_P2 * _LANE, _FC1), np.float32)
    for r in range(_P2):
        for oc in range(_C2):
            for j in range(_P2):
                Gflat[r * _LANE + oc * _P2 + j, :] = fc1w[:, oc * _P2 * _P2 + r * _P2 + j]
    bfc1 = fc1b[None, :]                                      # (1, 50)

    Wfc2 = fc2w.T.copy()                                      # (50, 10)
    bfc2 = fc2b[None, :]                                      # (1, 10)

    consts = {}
    for k, v in dict(B1eo=B1eo, Re1=Re1, Ro1=Ro1, B2eo=B2eo, Gflat=Gflat, Wfc2=Wfc2).items():
        consts[k] = jnp.asarray(v, jnp.bfloat16)
    for k, v in dict(bias1=bias1, bias2=bias2, bfc1=bfc1, bfc2=bfc2).items():
        consts[k] = jnp.asarray(v, jnp.float32)
    return consts


_CONST_NAMES = ("B1eo", "bias1", "Re1", "Ro1",
                "B2eo", "bias2", "Gflat", "bfc1", "Wfc2", "bfc2")


def net_forward(consts, x):
    # x: (N, 1, 28, 28) float32, NCHW
    N = x.shape[0]
    xs = x.reshape(N, _H, _H)
    args = [consts[k] for k in _CONST_NAMES]

    def rep_spec(a):
        nd = a.ndim
        return pl.BlockSpec(tuple(a.shape), lambda i, _nd=nd: (0,) * _nd)

    in_specs = [pl.BlockSpec((N, _H, _H), lambda i: (0, 0, 0))]
    in_specs += [rep_spec(a) for a in args]

    macs = N * (_K * _H1 * _H * 2 * _LANE      # conv1 (folded, packed)
                + 2 * _P1 * _H1 * _LANE        # pool1 row selections
                + _K * _H2 * _LANE * 2 * _LANE # conv2 (folded, packed)
                + _P2 * _LANE * _FC1           # fc1
                + _FC1 * _NCLS)                # fc2
    bytes_accessed = int(xs.size * xs.dtype.itemsize + N * _NCLS * 4
                         + sum(int(a.size) * a.dtype.itemsize for a in args))

    return pl.pallas_call(
        _make_fused_kernel(N),
        grid=(1,),
        out_shape=jax.ShapeDtypeStruct((N, _NCLS), jnp.float32),
        in_specs=in_specs,
        out_specs=pl.BlockSpec((N, _NCLS), lambda i: (0, 0)),
        scratch_shapes=[pltpu.VMEM((_P1, _LANE), jnp.float32),        # staged p1
                        pltpu.VMEM((N, _P2 * _LANE), jnp.float32)],   # flattened batch
        compiler_params=pltpu.CompilerParams(
            dimension_semantics=("arbitrary",)),
        cost_estimate=pl.CostEstimate(flops=2 * macs,
                                      transcendentals=16 * N,
                                      bytes_accessed=bytes_accessed),
    )(xs, *args)


# ---------------------------------------------------------------------------
# Plain-JAX reference of the PyTorch forward (for in-script validation only).
# ---------------------------------------------------------------------------
def reference_forward(raw, x):
    hi = jax.lax.Precision.HIGHEST

    def pool_relu(y):
        y = jnp.maximum(jnp.maximum(y[:, :, 0::2, 0::2], y[:, :, 0::2, 1::2]),
                        jnp.maximum(y[:, :, 1::2, 0::2], y[:, :, 1::2, 1::2]))
        return jnp.maximum(y, 0.0)

    y = jax.lax.conv_general_dilated(
        x, raw["conv1_w"], window_strides=(1, 1), padding="VALID",
        dimension_numbers=("NCHW", "OIHW", "NCHW"), precision=hi)
    y = pool_relu(y + raw["conv1_b"][None, :, None, None])
    y = jax.lax.conv_general_dilated(
        y, raw["conv2_w"], window_strides=(1, 1), padding="VALID",
        dimension_numbers=("NCHW", "OIHW", "NCHW"), precision=hi)
    y = pool_relu(y + raw["conv2_b"][None, :, None, None])
    y = y.reshape(-1, _C2 * _P2 * _P2)
    y = jnp.maximum(jnp.dot(y, raw["fc1_w"].T, precision=hi) + raw["fc1_b"], 0.0)
    z = jnp.dot(y, raw["fc2_w"].T, precision=hi) + raw["fc2_b"]
    return jax.nn.log_softmax(z, axis=-1)


def init_raw_params(key):
    ks = jax.random.split(key, 8)

    def u(k, shape, fan_in):
        bound = 1.0 / jnp.sqrt(jnp.float32(fan_in))
        return jax.random.uniform(k, shape, jnp.float32, -bound, bound)

    return {
        "conv1_w": u(ks[0], (10, 1, 5, 5), 25),
        "conv1_b": u(ks[1], (10,), 25),
        "conv2_w": u(ks[2], (20, 10, 5, 5), 250),
        "conv2_b": u(ks[3], (20,), 250),
        "fc1_w": u(ks[4], (50, 320), 320),
        "fc1_b": u(ks[5], (50,), 320),
        "fc2_w": u(ks[6], (10, 50), 50),
        "fc2_b": u(ks[7], (10,), 50),
    }


if __name__ == "__main__":
    key = jax.random.PRNGKey(0)
    pkey, xkey = jax.random.split(key)
    raw = init_raw_params(pkey)
    consts = prepare_constants(raw)      # one-time weight folding (free at inference)
    x = jax.random.normal(xkey, (2, 1, 28, 28), jnp.float32)

    out = jax.jit(net_forward)(consts, x)
    out = jax.block_until_ready(out)

    assert out.shape == (2, 10)
    assert bool(jnp.all(jnp.isfinite(out)))
    # log_softmax rows should exponentiate-sum to ~1
    assert bool(jnp.allclose(jnp.sum(jnp.exp(out), axis=1), 1.0, atol=1e-4))
    # compare against the plain-JAX f32 reference (tolerance covers the bf16 MXU
    # operand rounding used inside the kernel)
    ref = reference_forward(raw, x)
    assert bool(jnp.allclose(out, ref, atol=7.5e-2)), "mismatch vs reference forward"
    print("KERNEL_OK")
</pallas_src>

<mosaic_0001>
module attributes {stable_mosaic.version = 11 : i64} {
  func.func @kernel(%arg0: i32, %arg1: memref<2x28x28xf32, #tpu.memory_space<vmem>>, %arg2: memref<5x28x256xbf16, #tpu.memory_space<vmem>>, %arg3: memref<1x256xf32, #tpu.memory_space<vmem>>, %arg4: memref<12x24xbf16, #tpu.memory_space<vmem>>, %arg5: memref<12x24xbf16, #tpu.memory_space<vmem>>, %arg6: memref<5x128x256xbf16, #tpu.memory_space<vmem>>, %arg7: memref<1x256xf32, #tpu.memory_space<vmem>>, %arg8: memref<512x50xbf16, #tpu.memory_space<vmem>>, %arg9: memref<1x50xf32, #tpu.memory_space<vmem>>, %arg10: memref<50x10xbf16, #tpu.memory_space<vmem>>, %arg11: memref<1x10xf32, #tpu.memory_space<vmem>>, %arg12: memref<2x10xf32, #tpu.memory_space<vmem>>, %arg13: memref<12x128xf32, #tpu.memory_space<vmem>>, %arg14: memref<2x512xf32, #tpu.memory_space<vmem>>) attributes {dimension_semantics = [#tpu.dimension_semantics<arbitrary>], iteration_bounds = array<i64: 1>, scalar_prefetch = 0 : i64, scratch_operands = 2 : i64, tpu.core_type = #tpu.core_type<tc>, window_params = [{pipeline_mode = #tpu.pipeline_mode<synchronous>, transform_indices = @transform_0, window_bounds = array<i64: 2, 28, 28>}, {pipeline_mode = #tpu.pipeline_mode<synchronous>, transform_indices = @transform_1, window_bounds = array<i64: 5, 28, 256>}, {pipeline_mode = #tpu.pipeline_mode<synchronous>, transform_indices = @transform_2, window_bounds = array<i64: 1, 256>}, {pipeline_mode = #tpu.pipeline_mode<synchronous>, transform_indices = @transform_3, window_bounds = array<i64: 12, 24>}, {pipeline_mode = #tpu.pipeline_mode<synchronous>, transform_indices = @transform_4, window_bounds = array<i64: 12, 24>}, {pipeline_mode = #tpu.pipeline_mode<synchronous>, transform_indices = @transform_5, window_bounds = array<i64: 5, 128, 256>}, {pipeline_mode = #tpu.pipeline_mode<synchronous>, transform_indices = @transform_6, window_bounds = array<i64: 1, 256>}, {pipeline_mode = #tpu.pipeline_mode<synchronous>, transform_indices = @transform_7, window_bounds = array<i64: 512, 50>}, {pipeline_mode = #tpu.pipeline_mode<synchronous>, transform_indices = @transform_8, window_bounds = array<i64: 1, 50>}, {pipeline_mode = #tpu.pipeline_mode<synchronous>, transform_indices = @transform_9, window_bounds = array<i64: 50, 10>}, {pipeline_mode = #tpu.pipeline_mode<synchronous>, transform_indices = @transform_10, window_bounds = array<i64: 1, 10>}, {pipeline_mode = #tpu.pipeline_mode<synchronous>, transform_indices = @transform_11, window_bounds = array<i64: 2, 10>}]} {
    %c0 = arith.constant 0 : index
    %c0_0 = arith.constant 0 : index
    %0 = vector.load %arg3[%c0, %c0_0] : memref<1x256xf32, #tpu.memory_space<vmem>>, vector<1x256xf32>
    %c0_1 = arith.constant 0 : index
    %c0_2 = arith.constant 0 : index
    %c0_3 = arith.constant 0 : index
    %1 = vector.load %arg1[%c0_1, %c0_2, %c0_3] : memref<2x28x28xf32, #tpu.memory_space<vmem>>, vector<1x24x28xf32>
    %2 = vector.shape_cast %1 : vector<1x24x28xf32> to vector<24x28xf32>
    %3 = arith.truncf %2 : vector<24x28xf32> to vector<24x28xbf16>
    %c0_4 = arith.constant 0 : index
    %c0_5 = arith.constant 0 : index
    %c0_6 = arith.constant 0 : index
    %4 = vector.load %arg2[%c0_4, %c0_5, %c0_6] : memref<5x28x256xbf16, #tpu.memory_space<vmem>>, vector<1x28x256xbf16>
    %5 = vector.shape_cast %4 : vector<1x28x256xbf16> to vector<28x256xbf16>
    %cst = arith.constant dense<0.000000e+00> : vector<24x256xf32>
    %6 = tpu.matmul %3, %5, %cst {dimension_numbers = #tpu.dot_dimension_numbers<[1], [0], [0], [1], [0, 0, 1, 1], [], []>} : vector<24x28xbf16>, vector<28x256xbf16>, vector<24x256xf32> -> vector<24x256xf32>
    %7 = vector.broadcast %0 : vector<1x256xf32> to vector<24x256xf32>
    %8 = arith.addf %7, %6 : vector<24x256xf32>
    %c0_7 = arith.constant 0 : index
    %c1 = arith.constant 1 : index
    %c0_8 = arith.constant 0 : index
    %9 = vector.load %arg1[%c0_7, %c1, %c0_8] : memref<2x28x28xf32, #tpu.memory_space<vmem>>, vector<1x24x28xf32>
    %10 = vector.shape_cast %9 : vector<1x24x28xf32> to vector<24x28xf32>
    %11 = arith.truncf %10 : vector<24x28xf32> to vector<24x28xbf16>
    %c1_9 = arith.constant 1 : index
    %c0_10 = arith.constant 0 : index
    %c0_11 = arith.constant 0 : index
    %12 = vector.load %arg2[%c1_9, %c0_10, %c0_11] : memref<5x28x256xbf16, #tpu.memory_space<vmem>>, vector<1x28x256xbf16>
    %13 = vector.shape_cast %12 : vector<1x28x256xbf16> to vector<28x256xbf16>
    %cst_12 = arith.constant dense<0.000000e+00> : vector<24x256xf32>
    %14 = tpu.matmul %11, %13, %cst_12 {dimension_numbers = #tpu.dot_dimension_numbers<[1], [0], [0], [1], [0, 0, 1, 1], [], []>} : vector<24x28xbf16>, vector<28x256xbf16>, vector<24x256xf32> -> vector<24x256xf32>
    %15 = arith.addf %8, %14 : vector<24x256xf32>
    %c0_13 = arith.constant 0 : index
    %c2 = arith.constant 2 : index
    %c0_14 = arith.constant 0 : index
    %16 = vector.load %arg1[%c0_13, %c2, %c0_14] : memref<2x28x28xf32, #tpu.memory_space<vmem>>, vector<1x24x28xf32>
    %17 = vector.shape_cast %16 : vector<1x24x28xf32> to vector<24x28xf32>
    %18 = arith.truncf %17 : vector<24x28xf32> to vector<24x28xbf16>
    %c2_15 = arith.constant 2 : index
    %c0_16 = arith.constant 0 : index
    %c0_17 = arith.constant 0 : index
    %19 = vector.load %arg2[%c2_15, %c0_16, %c0_17] : memref<5x28x256xbf16, #tpu.memory_space<vmem>>, vector<1x28x256xbf16>
    %20 = vector.shape_cast %19 : vector<1x28x256xbf16> to vector<28x256xbf16>
    %cst_18 = arith.constant dense<0.000000e+00> : vector<24x256xf32>
    %21 = tpu.matmul %18, %20, %cst_18 {dimension_numbers = #tpu.dot_dimension_numbers<[1], [0], [0], [1], [0, 0, 1, 1], [], []>} : vector<24x28xbf16>, vector<28x256xbf16>, vector<24x256xf32> -> vector<24x256xf32>
    %22 = arith.addf %15, %21 : vector<24x256xf32>
    %c0_19 = arith.constant 0 : index
    %c3 = arith.constant 3 : index
    %c0_20 = arith.constant 0 : index
    %23 = vector.load %arg1[%c0_19, %c3, %c0_20] : memref<2x28x28xf32, #tpu.memory_space<vmem>>, vector<1x24x28xf32>
    %24 = vector.shape_cast %23 : vector<1x24x28xf32> to vector<24x28xf32>
    %25 = arith.truncf %24 : vector<24x28xf32> to vector<24x28xbf16>
    %c3_21 = arith.constant 3 : index
    %c0_22 = arith.constant 0 : index
    %c0_23 = arith.constant 0 : index
    %26 = vector.load %arg2[%c3_21, %c0_22, %c0_23] : memref<5x28x256xbf16, #tpu.memory_space<vmem>>, vector<1x28x256xbf16>
    %27 = vector.shape_cast %26 : vector<1x28x256xbf16> to vector<28x256xbf16>
    %cst_24 = arith.constant dense<0.000000e+00> : vector<24x256xf32>
    %28 = tpu.matmul %25, %27, %cst_24 {dimension_numbers = #tpu.dot_dimension_numbers<[1], [0], [0], [1], [0, 0, 1, 1], [], []>} : vector<24x28xbf16>, vector<28x256xbf16>, vector<24x256xf32> -> vector<24x256xf32>
    %29 = arith.addf %22, %28 : vector<24x256xf32>
    %c0_25 = arith.constant 0 : index
    %c4 = arith.constant 4 : index
    %c0_26 = arith.constant 0 : index
    %30 = vector.load %arg1[%c0_25, %c4, %c0_26] : memref<2x28x28xf32, #tpu.memory_space<vmem>>, vector<1x24x28xf32>
    %31 = vector.shape_cast %30 : vector<1x24x28xf32> to vector<24x28xf32>
    %32 = arith.truncf %31 : vector<24x28xf32> to vector<24x28xbf16>
    %c4_27 = arith.constant 4 : index
    %c0_28 = arith.constant 0 : index
    %c0_29 = arith.constant 0 : index
    %33 = vector.load %arg2[%c4_27, %c0_28, %c0_29] : memref<5x28x256xbf16, #tpu.memory_space<vmem>>, vector<1x28x256xbf16>
    %34 = vector.shape_cast %33 : vector<1x28x256xbf16> to vector<28x256xbf16>
    %cst_30 = arith.constant dense<0.000000e+00> : vector<24x256xf32>
    %35 = tpu.matmul %32, %34, %cst_30 {dimension_numbers = #tpu.dot_dimension_numbers<[1], [0], [0], [1], [0, 0, 1, 1], [], []>} : vector<24x28xbf16>, vector<28x256xbf16>, vector<24x256xf32> -> vector<24x256xf32>
    %36 = arith.addf %29, %35 : vector<24x256xf32>
    %37 = vector.extract_strided_slice %36 {offsets = [0, 0], sizes = [24, 128], strides = [1, 1]} : vector<24x256xf32> to vector<24x128xf32>
    %38 = vector.extract_strided_slice %36 {offsets = [0, 128], sizes = [24, 128], strides = [1, 1]} : vector<24x256xf32> to vector<24x128xf32>
    %39 = arith.maximumf %37, %38 : vector<24x128xf32>
    %40 = arith.truncf %39 : vector<24x128xf32> to vector<24x128xbf16>
    %c0_31 = arith.constant 0 : index
    %c0_32 = arith.constant 0 : index
    %41 = vector.load %arg4[%c0_31, %c0_32] : memref<12x24xbf16, #tpu.memory_space<vmem>>, vector<12x24xbf16>
    %cst_33 = arith.constant dense<0.000000e+00> : vector<12x128xf32>
    %42 = tpu.matmul %41, %40, %cst_33 {dimension_numbers = #tpu.dot_dimension_numbers<[1], [0], [0], [1], [0, 0, 1, 1], [], []>} : vector<12x24xbf16>, vector<24x128xbf16>, vector<12x128xf32> -> vector<12x128xf32>
    %c0_34 = arith.constant 0 : index
    %c0_35 = arith.constant 0 : index
    %43 = vector.load %arg5[%c0_34, %c0_35] : memref<12x24xbf16, #tpu.memory_space<vmem>>, vector<12x24xbf16>
    %cst_36 = arith.constant dense<0.000000e+00> : vector<12x128xf32>
    %44 = tpu.matmul %43, %40, %cst_36 {dimension_numbers = #tpu.dot_dimension_numbers<[1], [0], [0], [1], [0, 0, 1, 1], [], []>} : vector<12x24xbf16>, vector<24x128xbf16>, vector<12x128xf32> -> vector<12x128xf32>
    %45 = arith.maximumf %42, %44 : vector<12x128xf32>
    %cst_37 = arith.constant 0.000000e+00 : f32
    %46 = vector.broadcast %cst_37 : f32 to vector<12x128xf32>
    %47 = arith.maximumf %45, %46 : vector<12x128xf32>
    %c0_38 = arith.constant 0 : index
    %c0_39 = arith.constant 0 : index
    %48 = vector.load %arg13[%c0_38, %c0_39] : memref<12x128xf32, #tpu.memory_space<vmem>>, vector<12x128xf32>
    tpu.vector_store %arg13[%c0_38, %c0_39], %47 {strides = array<i32>} : memref<12x128xf32, #tpu.memory_space<vmem>>, vector<12x128xf32>,
    %c0_40 = arith.constant 0 : index
    %c0_41 = arith.constant 0 : index
    %49 = vector.load %arg7[%c0_40, %c0_41] : memref<1x256xf32, #tpu.memory_space<vmem>>, vector<1x256xf32>
    %c0_42 = arith.constant 0 : index
    %c0_43 = arith.constant 0 : index
    %50 = vector.load %arg13[%c0_42, %c0_43] : memref<12x128xf32, #tpu.memory_space<vmem>>, vector<8x128xf32>
    %51 = arith.truncf %50 : vector<8x128xf32> to vector<8x128xbf16>
    %c0_44 = arith.constant 0 : index
    %c0_45 = arith.constant 0 : index
    %c0_46 = arith.constant 0 : index
    %52 = vector.load %arg6[%c0_44, %c0_45, %c0_46] : memref<5x128x256xbf16, #tpu.memory_space<vmem>>, vector<1x128x256xbf16>
    %53 = vector.shape_cast %52 : vector<1x128x256xbf16> to vector<128x256xbf16>
    %cst_47 = arith.constant dense<0.000000e+00> : vector<8x256xf32>
    %54 = tpu.matmul %51, %53, %cst_47 {dimension_numbers = #tpu.dot_dimension_numbers<[1], [0], [0], [1], [0, 0, 1, 1], [], []>} : vector<8x128xbf16>, vector<128x256xbf16>, vector<8x256xf32> -> vector<8x256xf32>
    %55 = vector.broadcast %49 : vector<1x256xf32> to vector<8x256xf32>
    %56 = arith.addf %55, %54 : vector<8x256xf32>
    %c1_48 = arith.constant 1 : index
    %c0_49 = arith.constant 0 : index
    %57 = vector.load %arg13[%c1_48, %c0_49] : memref<12x128xf32, #tpu.memory_space<vmem>>, vector<8x128xf32>
    %58 = arith.truncf %57 : vector<8x128xf32> to vector<8x128xbf16>
    %c1_50 = arith.constant 1 : index
    %c0_51 = arith.constant 0 : index
    %c0_52 = arith.constant 0 : index
    %59 = vector.load %arg6[%c1_50, %c0_51, %c0_52] : memref<5x128x256xbf16, #tpu.memory_space<vmem>>, vector<1x128x256xbf16>
    %60 = vector.shape_cast %59 : vector<1x128x256xbf16> to vector<128x256xbf16>
    %cst_53 = arith.constant dense<0.000000e+00> : vector<8x256xf32>
    %61 = tpu.matmul %58, %60, %cst_53 {dimension_numbers = #tpu.dot_dimension_numbers<[1], [0], [0], [1], [0, 0, 1, 1], [], []>} : vector<8x128xbf16>, vector<128x256xbf16>, vector<8x256xf32> -> vector<8x256xf32>
    %62 = arith.addf %56, %61 : vector<8x256xf32>
    %c2_54 = arith.constant 2 : index
    %c0_55 = arith.constant 0 : index
    %63 = vector.load %arg13[%c2_54, %c0_55] : memref<12x128xf32, #tpu.memory_space<vmem>>, vector<8x128xf32>
    %64 = arith.truncf %63 : vector<8x128xf32> to vector<8x128xbf16>
    %c2_56 = arith.constant 2 : index
    %c0_57 = arith.constant 0 : index
    %c0_58 = arith.constant 0 : index
    %65 = vector.load %arg6[%c2_56, %c0_57, %c0_58] : memref<5x128x256xbf16, #tpu.memory_space<vmem>>, vector<1x128x256xbf16>
    %66 = vector.shape_cast %65 : vector<1x128x256xbf16> to vector<128x256xbf16>
    %cst_59 = arith.constant dense<0.000000e+00> : vector<8x256xf32>
    %67 = tpu.matmul %64, %66, %cst_59 {dimension_numbers = #tpu.dot_dimension_numbers<[1], [0], [0], [1], [0, 0, 1, 1], [], []>} : vector<8x128xbf16>, vector<128x256xbf16>, vector<8x256xf32> -> vector<8x256xf32>
    %68 = arith.addf %62, %67 : vector<8x256xf32>
    %c3_60 = arith.constant 3 : index
    %c0_61 = arith.constant 0 : index
    %69 = vector.load %arg13[%c3_60, %c0_61] : memref<12x128xf32, #tpu.memory_space<vmem>>, vector<8x128xf32>
    %70 = arith.truncf %69 : vector<8x128xf32> to vector<8x128xbf16>
    %c3_62 = arith.constant 3 : index
    %c0_63 = arith.constant 0 : index
    %c0_64 = arith.constant 0 : index
    %71 = vector.load %arg6[%c3_62, %c0_63, %c0_64] : memref<5x128x256xbf16, #tpu.memory_space<vmem>>, vector<1x128x256xbf16>
    %72 = vector.shape_cast %71 : vector<1x128x256xbf16> to vector<128x256xbf16>
    %cst_65 = arith.constant dense<0.000000e+00> : vector<8x256xf32>
    %73 = tpu.matmul %70, %72, %cst_65 {dimension_numbers = #tpu.dot_dimension_numbers<[1], [0], [0], [1], [0, 0, 1, 1], [], []>} : vector<8x128xbf16>, vector<128x256xbf16>, vector<8x256xf32> -> vector<8x256xf32>
    %74 = arith.addf %68, %73 : vector<8x256xf32>
    %c4_66 = arith.constant 4 : index
    %c0_67 = arith.constant 0 : index
    %75 = vector.load %arg13[%c4_66, %c0_67] : memref<12x128xf32, #tpu.memory_space<vmem>>, vector<8x128xf32>
    %76 = arith.truncf %75 : vector<8x128xf32> to vector<8x128xbf16>
    %c4_68 = arith.constant 4 : index
    %c0_69 = arith.constant 0 : index
    %c0_70 = arith.constant 0 : index
    %77 = vector.load %arg6[%c4_68, %c0_69, %c0_70] : memref<5x128x256xbf16, #tpu.memory_space<vmem>>, vector<1x128x256xbf16>
    %78 = vector.shape_cast %77 : vector<1x128x256xbf16> to vector<128x256xbf16>
    %cst_71 = arith.constant dense<0.000000e+00> : vector<8x256xf32>
    %79 = tpu.matmul %76, %78, %cst_71 {dimension_numbers = #tpu.dot_dimension_numbers<[1], [0], [0], [1], [0, 0, 1, 1], [], []>} : vector<8x128xbf16>, vector<128x256xbf16>, vector<8x256xf32> -> vector<8x256xf32>
    %80 = arith.addf %74, %79 : vector<8x256xf32>
    %81 = vector.extract_strided_slice %80 {offsets = [0, 0], sizes = [8, 128], strides = [1, 1]} : vector<8x256xf32> to vector<8x128xf32>
    %82 = vector.extract_strided_slice %80 {offsets = [0, 128], sizes = [8, 128], strides = [1, 1]} : vector<8x256xf32> to vector<8x128xf32>
    %83 = arith.maximumf %81, %82 : vector<8x128xf32>
    %84 = vector.extract_strided_slice %83 {offsets = [0, 0], sizes = [1, 128], strides = [1, 1]} : vector<8x128xf32> to vector<1x128xf32>
    %85 = vector.extract_strided_slice %83 {offsets = [1, 0], sizes = [1, 128], strides = [1, 1]} : vector<8x128xf32> to vector<1x128xf32>
    %86 = arith.maximumf %84, %85 : vector<1x128xf32>
    %cst_72 = arith.constant 0.000000e+00 : f32
    %87 = vector.broadcast %cst_72 : f32 to vector<1x128xf32>
    %88 = arith.maximumf %86, %87 : vector<1x128xf32>
    %c0_73 = arith.constant 0 : index
    %c0_74 = arith.constant 0 : index
    %89 = vector.load %arg14[%c0_73, %c0_74] : memref<2x512xf32, #tpu.memory_space<vmem>>, vector<1x128xf32>
    tpu.vector_store %arg14[%c0_73, %c0_74], %88 {strides = array<i32>} : memref<2x512xf32, #tpu.memory_space<vmem>>, vector<1x128xf32>,
    %90 = vector.extract_strided_slice %83 {offsets = [2, 0], sizes = [1, 128], strides = [1, 1]} : vector<8x128xf32> to vector<1x128xf32>
    %91 = vector.extract_strided_slice %83 {offsets = [3, 0], sizes = [1, 128], strides = [1, 1]} : vector<8x128xf32> to vector<1x128xf32>
    %92 = arith.maximumf %90, %91 : vector<1x128xf32>
    %cst_75 = arith.constant 0.000000e+00 : f32
    %93 = vector.broadcast %cst_75 : f32 to vector<1x128xf32>
    %94 = arith.maximumf %92, %93 : vector<1x128xf32>
    %c0_76 = arith.constant 0 : index
    %c128 = arith.constant 128 : index
    %95 = vector.load %arg14[%c0_76, %c128] : memref<2x512xf32, #tpu.memory_space<vmem>>, vector<1x128xf32>
    tpu.vector_store %arg14[%c0_76, %c128], %94 {strides = array<i32>} : memref<2x512xf32, #tpu.memory_space<vmem>>, vector<1x128xf32>,
    %96 = vector.extract_strided_slice %83 {offsets = [4, 0], sizes = [1, 128], strides = [1, 1]} : vector<8x128xf32> to vector<1x128xf32>
    %97 = vector.extract_strided_slice %83 {offsets = [5, 0], sizes = [1, 128], strides = [1, 1]} : vector<8x128xf32> to vector<1x128xf32>
    %98 = arith.maximumf %96, %97 : vector<1x128xf32>
    %cst_77 = arith.constant 0.000000e+00 : f32
    %99 = vector.broadcast %cst_77 : f32 to vector<1x128xf32>
    %100 = arith.maximumf %98, %99 : vector<1x128xf32>
    %c0_78 = arith.constant 0 : index
    %c256 = arith.constant 256 : index
    %101 = vector.load %arg14[%c0_78, %c256] : memref<2x512xf32, #tpu.memory_space<vmem>>, vector<1x128xf32>
    tpu.vector_store %arg14[%c0_78, %c256], %100 {strides = array<i32>} : memref<2x512xf32, #tpu.memory_space<vmem>>, vector<1x128xf32>,
    %102 = vector.extract_strided_slice %83 {offsets = [6, 0], sizes = [1, 128], strides = [1, 1]} : vector<8x128xf32> to vector<1x128xf32>
    %103 = vector.extract_strided_slice %83 {offsets = [7, 0], sizes = [1, 128], strides = [1, 1]} : vector<8x128xf32> to vector<1x128xf32>
    %104 = arith.maximumf %102, %103 : vector<1x128xf32>
    %cst_79 = arith.constant 0.000000e+00 : f32
    %105 = vector.broadcast %cst_79 : f32 to vector<1x128xf32>
    %106 = arith.maximumf %104, %105 : vector<1x128xf32>
    %c0_80 = arith.constant 0 : index
    %c384 = arith.constant 384 : index
    %107 = vector.load %arg14[%c0_80, %c384] : memref<2x512xf32, #tpu.memory_space<vmem>>, vector<1x128xf32>
    tpu.vector_store %arg14[%c0_80, %c384], %106 {strides = array<i32>} : memref<2x512xf32, #tpu.memory_space<vmem>>, vector<1x128xf32>,
    %c0_81 = arith.constant 0 : index
    %c0_82 = arith.constant 0 : index
    %108 = vector.load %arg3[%c0_81, %c0_82] : memref<1x256xf32, #tpu.memory_space<vmem>>, vector<1x256xf32>
    %c1_83 = arith.constant 1 : index
    %c0_84 = arith.constant 0 : index
    %c0_85 = arith.constant 0 : index
    %109 = vector.load %arg1[%c1_83, %c0_84, %c0_85] : memref<2x28x28xf32, #tpu.memory_space<vmem>>, vector<1x24x28xf32>
    %110 = vector.shape_cast %109 : vector<1x24x28xf32> to vector<24x28xf32>
    %111 = arith.truncf %110 : vector<24x28xf32> to vector<24x28xbf16>
    %c0_86 = arith.constant 0 : index
    %c0_87 = arith.constant 0 : index
    %c0_88 = arith.constant 0 : index
    %112 = vector.load %arg2[%c0_86, %c0_87, %c0_88] : memref<5x28x256xbf16, #tpu.memory_space<vmem>>, vector<1x28x256xbf16>
    %113 = vector.shape_cast %112 : vector<1x28x256xbf16> to vector<28x256xbf16>
    %cst_89 = arith.constant dense<0.000000e+00> : vector<24x256xf32>
    %114 = tpu.matmul %111, %113, %cst_89 {dimension_numbers = #tpu.dot_dimension_numbers<[1], [0], [0], [1], [0, 0, 1, 1], [], []>} : vector<24x28xbf16>, vector<28x256xbf16>, vector<24x256xf32> -> vector<24x256xf32>
    %115 = vector.broadcast %108 : vector<1x256xf32> to vector<24x256xf32>
    %116 = arith.addf %115, %114 : vector<24x256xf32>
    %c1_90 = arith.constant 1 : index
    %c1_91 = arith.constant 1 : index
    %c0_92 = arith.constant 0 : index
    %117 = vector.load %arg1[%c1_90, %c1_91, %c0_92] : memref<2x28x28xf32, #tpu.memory_space<vmem>>, vector<1x24x28xf32>
    %118 = vector.shape_cast %117 : vector<1x24x28xf32> to vector<24x28xf32>
    %119 = arith.truncf %118 : vector<24x28xf32> to vector<24x28xbf16>
    %c1_93 = arith.constant 1 : index
    %c0_94 = arith.constant 0 : index
    %c0_95 = arith.constant 0 : index
    %120 = vector.load %arg2[%c1_93, %c0_94, %c0_95] : memref<5x28x256xbf16, #tpu.memory_space<vmem>>, vector<1x28x256xbf16>
    %121 = vector.shape_cast %120 : vector<1x28x256xbf16> to vector<28x256xbf16>
    %cst_96 = arith.constant dense<0.000000e+00> : vector<24x256xf32>
    %122 = tpu.matmul %119, %121, %cst_96 {dimension_numbers = #tpu.dot_dimension_numbers<[1], [0], [0], [1], [0, 0, 1, 1], [], []>} : vector<24x28xbf16>, vector<28x256xbf16>, vector<24x256xf32> -> vector<24x256xf32>
    %123 = arith.addf %116, %122 : vector<24x256xf32>
    %c1_97 = arith.constant 1 : index
    %c2_98 = arith.constant 2 : index
    %c0_99 = arith.constant 0 : index
    %124 = vector.load %arg1[%c1_97, %c2_98, %c0_99] : memref<2x28x28xf32, #tpu.memory_space<vmem>>, vector<1x24x28xf32>
    %125 = vector.shape_cast %124 : vector<1x24x28xf32> to vector<24x28xf32>
    %126 = arith.truncf %125 : vector<24x28xf32> to vector<24x28xbf16>
    %c2_100 = arith.constant 2 : index
    %c0_101 = arith.constant 0 : index
    %c0_102 = arith.constant 0 : index
    %127 = vector.load %arg2[%c2_100, %c0_101, %c0_102] : memref<5x28x256xbf16, #tpu.memory_space<vmem>>, vector<1x28x256xbf16>
    %128 = vector.shape_cast %127 : vector<1x28x256xbf16> to vector<28x256xbf16>
    %cst_103 = arith.constant dense<0.000000e+00> : vector<24x256xf32>
    %129 = tpu.matmul %126, %128, %cst_103 {dimension_numbers = #tpu.dot_dimension_numbers<[1], [0], [0], [1], [0, 0, 1, 1], [], []>} : vector<24x28xbf16>, vector<28x256xbf16>, vector<24x256xf32> -> vector<24x256xf32>
    %130 = arith.addf %123, %129 : vector<24x256xf32>
    %c1_104 = arith.constant 1 : index
    %c3_105 = arith.constant 3 : index
    %c0_106 = arith.constant 0 : index
    %131 = vector.load %arg1[%c1_104, %c3_105, %c0_106] : memref<2x28x28xf32, #tpu.memory_space<vmem>>, vector<1x24x28xf32>
    %132 = vector.shape_cast %131 : vector<1x24x28xf32> to vector<24x28xf32>
    %133 = arith.truncf %132 : vector<24x28xf32> to vector<24x28xbf16>
    %c3_107 = arith.constant 3 : index
    %c0_108 = arith.constant 0 : index
    %c0_109 = arith.constant 0 : index
    %134 = vector.load %arg2[%c3_107, %c0_108, %c0_109] : memref<5x28x256xbf16, #tpu.memory_space<vmem>>, vector<1x28x256xbf16>
    %135 = vector.shape_cast %134 : vector<1x28x256xbf16> to vector<28x256xbf16>
    %cst_110 = arith.constant dense<0.000000e+00> : vector<24x256xf32>
    %136 = tpu.matmul %133, %135, %cst_110 {dimension_numbers = #tpu.dot_dimension_numbers<[1], [0], [0], [1], [0, 0, 1, 1], [], []>} : vector<24x28xbf16>, vector<28x256xbf16>, vector<24x256xf32> -> vector<24x256xf32>
    %137 = arith.addf %130, %136 : vector<24x256xf32>
    %c1_111 = arith.constant 1 : index
    %c4_112 = arith.constant 4 : index
    %c0_113 = arith.constant 0 : index
    %138 = vector.load %arg1[%c1_111, %c4_112, %c0_113] : memref<2x28x28xf32, #tpu.memory_space<vmem>>, vector<1x24x28xf32>
    %139 = vector.shape_cast %138 : vector<1x24x28xf32> to vector<24x28xf32>
    %140 = arith.truncf %139 : vector<24x28xf32> to vector<24x28xbf16>
    %c4_114 = arith.constant 4 : index
    %c0_115 = arith.constant 0 : index
    %c0_116 = arith.constant 0 : index
    %141 = vector.load %arg2[%c4_114, %c0_115, %c0_116] : memref<5x28x256xbf16, #tpu.memory_space<vmem>>, vector<1x28x256xbf16>
    %142 = vector.shape_cast %141 : vector<1x28x256xbf16> to vector<28x256xbf16>
    %cst_117 = arith.constant dense<0.000000e+00> : vector<24x256xf32>
    %143 = tpu.matmul %140, %142, %cst_117 {dimension_numbers = #tpu.dot_dimension_numbers<[1], [0], [0], [1], [0, 0, 1, 1], [], []>} : vector<24x28xbf16>, vector<28x256xbf16>, vector<24x256xf32> -> vector<24x256xf32>
    %144 = arith.addf %137, %143 : vector<24x256xf32>
    %145 = vector.extract_strided_slice %144 {offsets = [0, 0], sizes = [24, 128], strides = [1, 1]} : vector<24x256xf32> to vector<24x128xf32>
    %146 = vector.extract_strided_slice %144 {offsets = [0, 128], sizes = [24, 128], strides = [1, 1]} : vector<24x256xf32> to vector<24x128xf32>
    %147 = arith.maximumf %145, %146 : vector<24x128xf32>
    %148 = arith.truncf %147 : vector<24x128xf32> to vector<24x128xbf16>
    %c0_118 = arith.constant 0 : index
    %c0_119 = arith.constant 0 : index
    %149 = vector.load %arg4[%c0_118, %c0_119] : memref<12x24xbf16, #tpu.memory_space<vmem>>, vector<12x24xbf16>
    %cst_120 = arith.constant dense<0.000000e+00> : vector<12x128xf32>
    %150 = tpu.matmul %149, %148, %cst_120 {dimension_numbers = #tpu.dot_dimension_numbers<[1], [0], [0], [1], [0, 0, 1, 1], [], []>} : vector<12x24xbf16>, vector<24x128xbf16>, vector<12x128xf32> -> vector<12x128xf32>
    %c0_121 = arith.constant 0 : index
    %c0_122 = arith.constant 0 : index
    %151 = vector.load %arg5[%c0_121, %c0_122] : memref<12x24xbf16, #tpu.memory_space<vmem>>, vector<12x24xbf16>
    %cst_123 = arith.constant dense<0.000000e+00> : vector<12x128xf32>
    %152 = tpu.matmul %151, %148, %cst_123 {dimension_numbers = #tpu.dot_dimension_numbers<[1], [0], [0], [1], [0, 0, 1, 1], [], []>} : vector<12x24xbf16>, vector<24x128xbf16>, vector<12x128xf32> -> vector<12x128xf32>
    %153 = arith.maximumf %150, %152 : vector<12x128xf32>
    %cst_124 = arith.constant 0.000000e+00 : f32
    %154 = vector.broadcast %cst_124 : f32 to vector<12x128xf32>
    %155 = arith.maximumf %153, %154 : vector<12x128xf32>
    %c0_125 = arith.constant 0 : index
    %c0_126 = arith.constant 0 : index
    %156 = vector.load %arg13[%c0_125, %c0_126] : memref<12x128xf32, #tpu.memory_space<vmem>>, vector<12x128xf32>
    tpu.vector_store %arg13[%c0_125, %c0_126], %155 {strides = array<i32>} : memref<12x128xf32, #tpu.memory_space<vmem>>, vector<12x128xf32>,
    %c0_127 = arith.constant 0 : index
    %c0_128 = arith.constant 0 : index
    %157 = vector.load %arg7[%c0_127, %c0_128] : memref<1x256xf32, #tpu.memory_space<vmem>>, vector<1x256xf32>
    %c0_129 = arith.constant 0 : index
    %c0_130 = arith.constant 0 : index
    %158 = vector.load %arg13[%c0_129, %c0_130] : memref<12x128xf32, #tpu.memory_space<vmem>>, vector<8x128xf32>
    %159 = arith.truncf %158 : vector<8x128xf32> to vector<8x128xbf16>
    %c0_131 = arith.constant 0 : index
    %c0_132 = arith.constant 0 : index
    %c0_133 = arith.constant 0 : index
    %160 = vector.load %arg6[%c0_131, %c0_132, %c0_133] : memref<5x128x256xbf16, #tpu.memory_space<vmem>>, vector<1x128x256xbf16>
    %161 = vector.shape_cast %160 : vector<1x128x256xbf16> to vector<128x256xbf16>
    %cst_134 = arith.constant dense<0.000000e+00> : vector<8x256xf32>
    %162 = tpu.matmul %159, %161, %cst_134 {dimension_numbers = #tpu.dot_dimension_numbers<[1], [0], [0], [1], [0, 0, 1, 1], [], []>} : vector<8x128xbf16>, vector<128x256xbf16>, vector<8x256xf32> -> vector<8x256xf32>
    %163 = vector.broadcast %157 : vector<1x256xf32> to vector<8x256xf32>
    %164 = arith.addf %163, %162 : vector<8x256xf32>
    %c1_135 = arith.constant 1 : index
    %c0_136 = arith.constant 0 : index
    %165 = vector.load %arg13[%c1_135, %c0_136] : memref<12x128xf32, #tpu.memory_space<vmem>>, vector<8x128xf32>
    %166 = arith.truncf %165 : vector<8x128xf32> to vector<8x128xbf16>
    %c1_137 = arith.constant 1 : index
    %c0_138 = arith.constant 0 : index
    %c0_139 = arith.constant 0 : index
    %167 = vector.load %arg6[%c1_137, %c0_138, %c0_139] : memref<5x128x256xbf16, #tpu.memory_space<vmem>>, vector<1x128x256xbf16>
    %168 = vector.shape_cast %167 : vector<1x128x256xbf16> to vector<128x256xbf16>
    %cst_140 = arith.constant dense<0.000000e+00> : vector<8x256xf32>
    %169 = tpu.matmul %166, %168, %cst_140 {dimension_numbers = #tpu.dot_dimension_numbers<[1], [0], [0], [1], [0, 0, 1, 1], [], []>} : vector<8x128xbf16>, vector<128x256xbf16>, vector<8x256xf32> -> vector<8x256xf32>
    %170 = arith.addf %164, %169 : vector<8x256xf32>
    %c2_141 = arith.constant 2 : index
    %c0_142 = arith.constant 0 : index
    %171 = vector.load %arg13[%c2_141, %c0_142] : memref<12x128xf32, #tpu.memory_space<vmem>>, vector<8x128xf32>
    %172 = arith.truncf %171 : vector<8x128xf32> to vector<8x128xbf16>
    %c2_143 = arith.constant 2 : index
    %c0_144 = arith.constant 0 : index
    %c0_145 = arith.constant 0 : index
    %173 = vector.load %arg6[%c2_143, %c0_144, %c0_145] : memref<5x128x256xbf16, #tpu.memory_space<vmem>>, vector<1x128x256xbf16>
    %174 = vector.shape_cast %173 : vector<1x128x256xbf16> to vector<128x256xbf16>
    %cst_146 = arith.constant dense<0.000000e+00> : vector<8x256xf32>
    %175 = tpu.matmul %172, %174, %cst_146 {dimension_numbers = #tpu.dot_dimension_numbers<[1], [0], [0], [1], [0, 0, 1, 1], [], []>} : vector<8x128xbf16>, vector<128x256xbf16>, vector<8x256xf32> -> vector<8x256xf32>
    %176 = arith.addf %170, %175 : vector<8x256xf32>
    %c3_147 = arith.constant 3 : index
    %c0_148 = arith.constant 0 : index
    %177 = vector.load %arg13[%c3_147, %c0_148] : memref<12x128xf32, #tpu.memory_space<vmem>>, vector<8x128xf32>
    %178 = arith.truncf %177 : vector<8x128xf32> to vector<8x128xbf16>
    %c3_149 = arith.constant 3 : index
    %c0_150 = arith.constant 0 : index
    %c0_151 = arith.constant 0 : index
    %179 = vector.load %arg6[%c3_149, %c0_150, %c0_151] : memref<5x128x256xbf16, #tpu.memory_space<vmem>>, vector<1x128x256xbf16>
    %180 = vector.shape_cast %179 : vector<1x128x256xbf16> to vector<128x256xbf16>
    %cst_152 = arith.constant dense<0.000000e+00> : vector<8x256xf32>
    %181 = tpu.matmul %178, %180, %cst_152 {dimension_numbers = #tpu.dot_dimension_numbers<[1], [0], [0], [1], [0, 0, 1, 1], [], []>} : vector<8x128xbf16>, vector<128x256xbf16>, vector<8x256xf32> -> vector<8x256xf32>
    %182 = arith.addf %176, %181 : vector<8x256xf32>
    %c4_153 = arith.constant 4 : index
    %c0_154 = arith.constant 0 : index
    %183 = vector.load %arg13[%c4_153, %c0_154] : memref<12x128xf32, #tpu.memory_space<vmem>>, vector<8x128xf32>
    %184 = arith.truncf %183 : vector<8x128xf32> to vector<8x128xbf16>
    %c4_155 = arith.constant 4 : index
    %c0_156 = arith.constant 0 : index
    %c0_157 = arith.constant 0 : index
    %185 = vector.load %arg6[%c4_155, %c0_156, %c0_157] : memref<5x128x256xbf16, #tpu.memory_space<vmem>>, vector<1x128x256xbf16>
    %186 = vector.shape_cast %185 : vector<1x128x256xbf16> to vector<128x256xbf16>
    %cst_158 = arith.constant dense<0.000000e+00> : vector<8x256xf32>
    %187 = tpu.matmul %184, %186, %cst_158 {dimension_numbers = #tpu.dot_dimension_numbers<[1], [0], [0], [1], [0, 0, 1, 1], [], []>} : vector<8x128xbf16>, vector<128x256xbf16>, vector<8x256xf32> -> vector<8x256xf32>
    %188 = arith.addf %182, %187 : vector<8x256xf32>
    %189 = vector.extract_strided_slice %188 {offsets = [0, 0], sizes = [8, 128], strides = [1, 1]} : vector<8x256xf32> to vector<8x128xf32>
    %190 = vector.extract_strided_slice %188 {offsets = [0, 128], sizes = [8, 128], strides = [1, 1]} : vector<8x256xf32> to vector<8x128xf32>
    %191 = arith.maximumf %189, %190 : vector<8x128xf32>
    %192 = vector.extract_strided_slice %191 {offsets = [0, 0], sizes = [1, 128], strides = [1, 1]} : vector<8x128xf32> to vector<1x128xf32>
    %193 = vector.extract_strided_slice %191 {offsets = [1, 0], sizes = [1, 128], strides = [1, 1]} : vector<8x128xf32> to vector<1x128xf32>
    %194 = arith.maximumf %192, %193 : vector<1x128xf32>
    %cst_159 = arith.constant 0.000000e+00 : f32
    %195 = vector.broadcast %cst_159 : f32 to vector<1x128xf32>
    %196 = arith.maximumf %194, %195 : vector<1x128xf32>
    %c1_160 = arith.constant 1 : index
    %c0_161 = arith.constant 0 : index
    %197 = vector.load %arg14[%c1_160, %c0_161] : memref<2x512xf32, #tpu.memory_space<vmem>>, vector<1x128xf32>
    tpu.vector_store %arg14[%c1_160, %c0_161], %196 {strides = array<i32>} : memref<2x512xf32, #tpu.memory_space<vmem>>, vector<1x128xf32>,
    %198 = vector.extract_strided_slice %191 {offsets = [2, 0], sizes = [1, 128], strides = [1, 1]} : vector<8x128xf32> to vector<1x128xf32>
    %199 = vector.extract_strided_slice %191 {offsets = [3, 0], sizes = [1, 128], strides = [1, 1]} : vector<8x128xf32> to vector<1x128xf32>
    %200 = arith.maximumf %198, %199 : vector<1x128xf32>
    %cst_162 = arith.constant 0.000000e+00 : f32
    %201 = vector.broadcast %cst_162 : f32 to vector<1x128xf32>
    %202 = arith.maximumf %200, %201 : vector<1x128xf32>
    %c1_163 = arith.constant 1 : index
    %c128_164 = arith.constant 128 : index
    %203 = vector.load %arg14[%c1_163, %c128_164] : memref<2x512xf32, #tpu.memory_space<vmem>>, vector<1x128xf32>
    tpu.vector_store %arg14[%c1_163, %c128_164], %202 {strides = array<i32>} : memref<2x512xf32, #tpu.memory_space<vmem>>, vector<1x128xf32>,
    %204 = vector.extract_strided_slice %191 {offsets = [4, 0], sizes = [1, 128], strides = [1, 1]} : vector<8x128xf32> to vector<1x128xf32>
    %205 = vector.extract_strided_slice %191 {offsets = [5, 0], sizes = [1, 128], strides = [1, 1]} : vector<8x128xf32> to vector<1x128xf32>
    %206 = arith.maximumf %204, %205 : vector<1x128xf32>
    %cst_165 = arith.constant 0.000000e+00 : f32
    %207 = vector.broadcast %cst_165 : f32 to vector<1x128xf32>
    %208 = arith.maximumf %206, %207 : vector<1x128xf32>
    %c1_166 = arith.constant 1 : index
    %c256_167 = arith.constant 256 : index
    %209 = vector.load %arg14[%c1_166, %c256_167] : memref<2x512xf32, #tpu.memory_space<vmem>>, vector<1x128xf32>
    tpu.vector_store %arg14[%c1_166, %c256_167], %208 {strides = array<i32>} : memref<2x512xf32, #tpu.memory_space<vmem>>, vector<1x128xf32>,
    %210 = vector.extract_strided_slice %191 {offsets = [6, 0], sizes = [1, 128], strides = [1, 1]} : vector<8x128xf32> to vector<1x128xf32>
    %211 = vector.extract_strided_slice %191 {offsets = [7, 0], sizes = [1, 128], strides = [1, 1]} : vector<8x128xf32> to vector<1x128xf32>
    %212 = arith.maximumf %210, %211 : vector<1x128xf32>
    %cst_168 = arith.constant 0.000000e+00 : f32
    %213 = vector.broadcast %cst_168 : f32 to vector<1x128xf32>
    %214 = arith.maximumf %212, %213 : vector<1x128xf32>
    %c1_169 = arith.constant 1 : index
    %c384_170 = arith.constant 384 : index
    %215 = vector.load %arg14[%c1_169, %c384_170] : memref<2x512xf32, #tpu.memory_space<vmem>>, vector<1x128xf32>
    tpu.vector_store %arg14[%c1_169, %c384_170], %214 {strides = array<i32>} : memref<2x512xf32, #tpu.memory_space<vmem>>, vector<1x128xf32>,
    %c0_171 = arith.constant 0 : index
    %c0_172 = arith.constant 0 : index
    %216 = vector.load %arg14[%c0_171, %c0_172] : memref<2x512xf32, #tpu.memory_space<vmem>>, vector<2x512xf32>
    %217 = arith.truncf %216 : vector<2x512xf32> to vector<2x512xbf16>
    %c0_173 = arith.constant 0 : index
    %c0_174 = arith.constant 0 : index
    %218 = vector.load %arg8[%c0_173, %c0_174] : memref<512x50xbf16, #tpu.memory_space<vmem>>, vector<512x50xbf16>
    %cst_175 = arith.constant dense<0.000000e+00> : vector<2x50xf32>
    %219 = tpu.matmul %217, %218, %cst_175 {dimension_numbers = #tpu.dot_dimension_numbers<[1], [0], [0], [1], [0, 0, 1, 1], [], []>} : vector<2x512xbf16>, vector<512x50xbf16>, vector<2x50xf32> -> vector<2x50xf32>
    %c0_176 = arith.constant 0 : index
    %c0_177 = arith.constant 0 : index
    %220 = vector.load %arg9[%c0_176, %c0_177] : memref<1x50xf32, #tpu.memory_space<vmem>>, vector<1x50xf32>
    %221 = vector.broadcast %220 : vector<1x50xf32> to vector<2x50xf32>
    %222 = arith.addf %219, %221 : vector<2x50xf32>
    %cst_178 = arith.constant 0.000000e+00 : f32
    %223 = vector.broadcast %cst_178 : f32 to vector<2x50xf32>
    %224 = arith.maximumf %222, %223 : vector<2x50xf32>
    %225 = arith.truncf %224 : vector<2x50xf32> to vector<2x50xbf16>
    %c0_179 = arith.constant 0 : index
    %c0_180 = arith.constant 0 : index
    %226 = vector.load %arg10[%c0_179, %c0_180] : memref<50x10xbf16, #tpu.memory_space<vmem>>, vector<50x10xbf16>
    %cst_181 = arith.constant dense<0.000000e+00> : vector<2x10xf32>
    %227 = tpu.matmul %225, %226, %cst_181 {dimension_numbers = #tpu.dot_dimension_numbers<[1], [0], [0], [1], [0, 0, 1, 1], [], []>} : vector<2x50xbf16>, vector<50x10xbf16>, vector<2x10xf32> -> vector<2x10xf32>
    %c0_182 = arith.constant 0 : index
    %c0_183 = arith.constant 0 : index
    %228 = vector.load %arg11[%c0_182, %c0_183] : memref<1x10xf32, #tpu.memory_space<vmem>>, vector<1x10xf32>
    %229 = vector.broadcast %228 : vector<1x10xf32> to vector<2x10xf32>
    %230 = arith.addf %227, %229 : vector<2x10xf32>
    %cst_184 = arith.constant dense<0xFF800000> : vector<2xf32>
    %231 = vector.multi_reduction <maximumf>, %230, %cst_184 [1] : vector<2x10xf32> to vector<2xf32>
    %232 = vector.shape_cast %231 : vector<2xf32> to vector<2x1xf32>
    %233 = vector.broadcast %232 : vector<2x1xf32> to vector<2x10xf32>
    %234 = arith.subf %230, %233 : vector<2x10xf32>
    %235 = math.exp %234 : vector<2x10xf32>
    %cst_185 = arith.constant dense<0.000000e+00> : vector<2xf32>
    %236 = vector.multi_reduction <add>, %235, %cst_185 [1] : vector<2x10xf32> to vector<2xf32>
    %237 = vector.shape_cast %236 : vector<2xf32> to vector<2x1xf32>
    %238 = math.log %237 : vector<2x1xf32>
    %239 = vector.broadcast %238 : vector<2x1xf32> to vector<2x10xf32>
    %240 = arith.subf %234, %239 : vector<2x10xf32>
    %c0_186 = arith.constant 0 : index
    %c0_187 = arith.constant 0 : index
    %241 = vector.load %arg12[%c0_186, %c0_187] : memref<2x10xf32, #tpu.memory_space<vmem>>, vector<2x10xf32>
    tpu.vector_store %arg12[%c0_186, %c0_187], %240 {strides = array<i32>} : memref<2x10xf32, #tpu.memory_space<vmem>>, vector<2x10xf32>,
    return
  }
  func.func @transform_0(%arg0: i32) -> (i32, i32, i32) {
    %c0_i32 = arith.constant 0 : i32
    %c0_i32_0 = arith.constant 0 : i32
    %c0_i32_1 = arith.constant 0 : i32
    %c0_i32_2 = arith.constant 0 : i32
    return %c0_i32, %c0_i32_0, %c0_i32_1 : i32, i32, i32
  }
  func.func @transform_1(%arg0: i32) -> (i32, i32, i32) {
    %c0_i32 = arith.constant 0 : i32
    %c0_i32_0 = arith.constant 0 : i32
    %c0_i32_1 = arith.constant 0 : i32
    %c0_i32_2 = arith.constant 0 : i32
    return %c0_i32, %c0_i32_0, %c0_i32_1 : i32, i32, i32
  }
  func.func @transform_2(%arg0: i32) -> (i32, i32) {
    %c0_i32 = arith.constant 0 : i32
    %c0_i32_0 = arith.constant 0 : i32
    %c0_i32_1 = arith.constant 0 : i32
    return %c0_i32, %c0_i32_0 : i32, i32
  }
  func.func @transform_3(%arg0: i32) -> (i32, i32) {
    %c0_i32 = arith.constant 0 : i32
    %c0_i32_0 = arith.constant 0 : i32
    %c0_i32_1 = arith.constant 0 : i32
    return %c0_i32, %c0_i32_0 : i32, i32
  }
  func.func @transform_4(%arg0: i32) -> (i32, i32) {
    %c0_i32 = arith.constant 0 : i32
    %c0_i32_0 = arith.constant 0 : i32
    %c0_i32_1 = arith.constant 0 : i32
    return %c0_i32, %c0_i32_0 : i32, i32
  }
  func.func @transform_5(%arg0: i32) -> (i32, i32, i32) {
    %c0_i32 = arith.constant 0 : i32
    %c0_i32_0 = arith.constant 0 : i32
    %c0_i32_1 = arith.constant 0 : i32
    %c0_i32_2 = arith.constant 0 : i32
    return %c0_i32, %c0_i32_0, %c0_i32_1 : i32, i32, i32
  }
  func.func @transform_6(%arg0: i32) -> (i32, i32) {
    %c0_i32 = arith.constant 0 : i32
    %c0_i32_0 = arith.constant 0 : i32
    %c0_i32_1 = arith.constant 0 : i32
    return %c0_i32, %c0_i32_0 : i32, i32
  }
  func.func @transform_7(%arg0: i32) -> (i32, i32) {
    %c0_i32 = arith.constant 0 : i32
    %c0_i32_0 = arith.constant 0 : i32
    %c0_i32_1 = arith.constant 0 : i32
    return %c0_i32, %c0_i32_0 : i32, i32
  }
  func.func @transform_8(%arg0: i32) -> (i32, i32) {
    %c0_i32 = arith.constant 0 : i32
    %c0_i32_0 = arith.constant 0 : i32
    %c0_i32_1 = arith.constant 0 : i32
    return %c0_i32, %c0_i32_0 : i32, i32
  }
  func.func @transform_9(%arg0: i32) -> (i32, i32) {
    %c0_i32 = arith.constant 0 : i32
    %c0_i32_0 = arith.constant 0 : i32
    %c0_i32_1 = arith.constant 0 : i32
    return %c0_i32, %c0_i32_0 : i32, i32
  }
  func.func @transform_10(%arg0: i32) -> (i32, i32) {
    %c0_i32 = arith.constant 0 : i32
    %c0_i32_0 = arith.constant 0 : i32
    %c0_i32_1 = arith.constant 0 : i32
    return %c0_i32, %c0_i32_0 : i32, i32
  }
  func.func @transform_11(%arg0: i32) -> (i32, i32) {
    %c0_i32 = arith.constant 0 : i32
    %c0_i32_0 = arith.constant 0 : i32
    %c0_i32_1 = arith.constant 0 : i32
    return %c0_i32, %c0_i32_0 : i32, i32
  }
}

</mosaic_0001>

<bundles_post_ra>
// kernel: net_forward.1
= control target key start
LH: loop header
LB: loop body
LE: loop exit
PB: predicated region body
PF: predicated region fallthrough
CT: control target
= control target key end

     0   :  { %16 = vsyncpa [#allocation5], 0  ;;  %s4905_s0 = inlined_call_operand.vmem [shape: f32[2,28,28], index: 0, kind: input, shape index: {}]   ;;  %s4906_s1 = inlined_call_operand.vmem [shape: bf16[5,28,256], index: 1, kind: input, shape index: {}]   ;;  %s4907_s2 = inlined_call_operand.vmem [shape: f32[1,256], index: 2, kind: input, shape index: {}]   ;;  %s4908_s3 = inlined_call_operand.vmem [shape: bf16[12,24], index: 3, kind: input, shape index: {}]   ;;  %s4909_s4 = inlined_call_operand.vmem [shape: bf16[12,24], index: 4, kind: input, shape index: {}]   ;;  %s4910_s5 = inlined_call_operand.hbm [shape: bf16[5,128,256], index: 5, kind: input, shape index: {}]   ;;  %s4911_s6 = inlined_call_operand.vmem [shape: f32[1,256], index: 6, kind: input, shape index: {}]   ;;  %s4912_s7 = inlined_call_operand.vmem [shape: bf16[512,50], index: 7, kind: input, shape index: {}]   ;;  %s4913_s8 = inlined_call_operand.vmem [shape: f32[1,50], index: 8, kind: input, shape index: {}]   ;;  %s4914_s9 = inlined_call_operand.vmem [shape: bf16[50,10], index: 9, kind: input, shape index: {}]   ;;  %s4915_s10 = inlined_call_operand.vmem [shape: f32[1,10], index: 10, kind: input, shape index: {}]   ;;  %s4916_s11 = inlined_call_operand.hbm [shape: f32[2,10], index: 11, kind: output, shape index: {}]  }
   0x1   :  { %17 = vsyncpa [#allocation6], 0  ;;  %s4062_s17 = smov [#allocation4]   ;;  %s4014_s21 = scalar_lea.hbm %s4910_s5, 10240 }
   0x2   :  { %s33_s18 = sshll.u32 %s4062_s17, 4  ;;  %p4015_p0 = scmp.ne.s32.totalorder %s4910_s5, %s4014_s21  ;;  %s34_s18 = int_to_ptr.vmem [resolvable:$true] %s33_s18 }
   0x3   :  { %p4018_p1 = scmp.lt.u32.totalorder %s4014_s21, %s4910_s5 }
   0x5   :  { %p4020_p2 = pnand %p4018_p1, %p4015_p0 }
   0x7   :  { %4023 = shalt.err (!%p4020_p2)
}
   0x8   :  { %s4024_s26 = scalar_lea.vmem %s34_s18, 10240  ;;  %p4029_p4 = scmp.lt.s32.totalorder %s34_s18, %s34_s18 }
   0x9   :  { %p4025_p3 = scmp.ne.s32.totalorder %s34_s18, %s4024_s26  ;;  %p4030_p5 = scmp.lt.s32.totalorder %s4024_s26, %s4024_s26 }
   0xb   :  { %p4031_p6 = por %p4030_p5, %p4029_p4 }
   0xd   :  { %p4032_p7 = pnand %p4031_p6, %p4025_p3 }
   0xf   :  { %4035 = shalt.err (!%p4032_p7)
}
  0x10   :  { %s4063_s27 = smov 128   ;;  %s4064_s28 = smov 8  }
  0x11   :  { %39 = dma.hbm_to_vmem [thread:$0]  %s4910_s5, 10240, %s34_s18, [#allocation5], %s4063_s27, %s4063_s27, %s4064_s28  }
  0x12   :  { %4058 = dma.done.wait [#allocation5], 10240  }
  0x13   :  { %4059 = vsyncadd [#allocation5], 4294957056  ;;  %v4065_v0 = vmov 0   ;;  %v4147_v1 = vld [vmem:[%s4906_s1 + $0x4] ss:$8 sps:$4 sm:$0xff]   ;;  %v4157_v3 = vld [vmem:[%s4906_s1 + $0x10] sm:$0xff] }
  0x14   :  { %128 = vmatprep.mubr.bf16.mxu0 %v4065_v0  ;;  %138 = vmatprep.mubr.bf16.mxu1 %v4065_v0  ;;  %v4152_v2 = vld [vmem:[%s4906_s1] ss:$8 sps:$4 sm:$0xff]   ;;  %v63_v4 = vld [vmem:[%s4906_s1 + $0x18] sm:$0x33]  ;;  %vm89_vm0 = vcmask 1045504   ;;  %v4184_v11 = vld [vmem:[%s4906_s1 + $0x30] sm:$0xff] }
  0x15   :  { %96 = vmatprep.subr.bf16.mxu0 %v4147_v1  ;;  %v3266_v5 = vcombine.high %v4157_v3, %v63_v4  ;;  %v3265_v6 = vcombine.low %v4157_v3, %v63_v4  ;;  %3694 = vmatprep.subr.bf16.mxu1 %v4147_v1  ;;  %v55_v7 = vld [vmem:[%s4905_s0] sm:$0xff]  ;;  %v56_v8 = vld [vmem:[%s4905_s0 + $0x8] sm:$0xff]  ;;  %v3273_v12 = vld [vmem:[%s4906_s1 + $0x38] sm:$0x33]  ;;  %vm82_vm1 = vcmask 228352   ;;  %vm4067_vm2 = vmmov 0  }
  0x16   :  { %97 = vmatpush1.bf16.msra.mxu0 %v4152_v2  ;;  %3696 = vmatpush1.bf16.msra.mxu1 %v4152_v2  ;;  %v4179_v10 = vld [vmem:[%s4906_s1 + $0x24] ss:$8 sps:$4 sm:$0xff]   ;;  %v58_v13 = vpack.c.bf16 %v56_v8, %v55_v7  ;;  %v4193_v14 = vld [vmem:[%s4906_s1 + $0x20] ss:$8 sps:$4 sm:$0xff]   ;;  %v3277_v15 = vcombine.high %v4184_v11, %v3273_v12  ;;  %v3276_v16 = vcombine.low %v4184_v11, %v3273_v12  ;;  %v57_v19 = vld [vmem:[%s4905_s0 + $0x10] sm:$0xff]  ;;  %vm568_vm3 = vcmask 1043456  }
  0x17   :  { %3267 = vmatprep.subr.msk.bf16.mxu0 %vm89_vm0, %v3266_v5  ;;  %v91_v9 = vsel %vm89_vm0, %v3265_v6, 0  ;;  %3695 = vmatprep.subr.msk.bf16.mxu1 %vm89_vm0, %v3266_v5  ;;  %v4206_v18 = vld [vmem:[%s4906_s1 + $0x44] ss:$8 sps:$4 sm:$0xff]   ;;  %v59_v22 = vpack.c.bf16 %v57_v19, %v57_v19  ;;  %v4221_v23 = vld [vmem:[%s4906_s1 + $0x50] sm:$0xff]  ;;  %v3284_v24 = vld [vmem:[%s4906_s1 + $0x58] sm:$0x33] }
  0x18   :  { %v199_v17 = vsel %vm89_vm0, %v3276_v16, 0  ;;  %v164_v20 = vld [vmem:[%s4905_s0 + $0x1] sm:$0xff]  ;;  %v165_v21 = vld [vmem:[%s4905_s0 + $0x9] sm:$0xff]  ;;  %v3288_v27 = vcombine.high %v4221_v23, %v3284_v24  ;;  %v3287_v28 = vcombine.low %v4221_v23, %v3284_v24  ;;  %v166_v29 = vld [vmem:[%s4905_s0 + $0x11] sm:$0xff]  ;;  %vm564_vm4 = vcmask 195584  }
  0x19   :  { %v167_v25 = vpack.c.bf16 %v165_v21, %v164_v20  ;;  %v4230_v26 = vld [vmem:[%s4906_s1 + $0x40] ss:$8 sps:$4 sm:$0xff]   ;;  %v4243_v30 = vld [vmem:[%s4906_s1 + $0x64] ss:$8 sps:$4 sm:$0xff]   ;;  %v168_v32 = vpack.c.bf16 %v166_v29, %v166_v29  ;;  %v4259_v35 = vld [vmem:[%s4906_s1 + $0x70] sm:$0xff]  ;;  %vm3190_vm5 = vcmask 1040384  }
  0x1a   :  { %99 = vmatpush1.bf16.msra.mxu0 %v91_v9  ;;  %3697 = vmatpush1.bf16.msra.mxu1 %v91_v9  ;;  %v296_v31 = vsel %vm89_vm0, %v3287_v28, 0  ;;  %v261_v33 = vld [vmem:[%s4905_s0 + $0x2] sm:$0xff]  ;;  %v262_v34 = vld [vmem:[%s4905_s0 + $0xa] sm:$0xff]  ;;  %v3295_v36 = vld [vmem:[%s4906_s1 + $0x78] sm:$0x33]  ;;  %vm3186_vm6 = vcmask 408576  }
  0x1b   :  { %204 = vmatprep.subr.bf16.mxu0 %v4179_v10  ;;  %v4267_v37 = vld [vmem:[%s4906_s1 + $0x60] ss:$8 sps:$4 sm:$0xff]   ;;  %v264_v38 = vpack.c.bf16 %v262_v34, %v261_v33  ;;  %v3299_v39 = vcombine.high %v4259_v35, %v3295_v36  ;;  %v3298_v40 = vcombine.low %v4259_v35, %v3295_v36  ;;  %v263_v41 = vld [vmem:[%s4905_s0 + $0x12] sm:$0xff]  ;;  %v4278_v42 = vld [vmem:[%s4906_s1 + $0x84] ss:$8 sps:$4 sm:$0xff]   ;;  %vm3234_vm7 = vcmask 74752  }
  0x1c   :  { %v4287_v44 = vld [vmem:[%s4906_s1 + $0x90] sm:$0xff]  ;;  %v3306_v45 = vld [vmem:[%s4906_s1 + $0x98] sm:$0x33]  ;;  %v265_v46 = vpack.c.bf16 %v263_v41, %v263_v41  ;;  %v358_v48 = vld [vmem:[%s4905_s0 + $0x3] sm:$0xff] }
  0x1d   :  { %3268 = vmatmul.mubr.msk.bf16.vlgmr.msra.gmra.mrb[0].mxu0 %vm82_vm1, %v58_v13  ;;  %3269 = vmatmul.mubr.msk.bf16.vlgmr.msra.gmra.mrb[0].mxu1 %vm82_vm1, %v59_v22  ;;  %v393_v43 = vsel %vm89_vm0, %v3298_v40, 0  ;;  %v1432_v47 = vld [vmem:[%s4906_s1 + $0x18] sm:$0x33]  ;;  %v359_v49 = vld [vmem:[%s4905_s0 + $0xb] sm:$0xff]  ;;  %v3309_v50 = vcombine.low %v4287_v44, %v3306_v45  ;;  %v3310_v56 = vcombine.high %v4287_v44, %v3306_v45  ;;  %v3423_v20 = vld [vmem:[%s4905_s0 + $0x22] sm:$0xff] }
  0x1e   :  { %205 = vmatpush1.bf16.msra.mxu0 %v4193_v14  ;;  %236 = vmatprep.mubr.bf16.mxu0 %v4065_v0  ;;  %v3404_v51 = vcombine.low %v4157_v3, %v1432_v47  ;;  %v4309_v52 = vld [vmem:[%s4906_s1 + $0x80] ss:$8 sps:$4 sm:$0xff]   ;;  %v361_v53 = vpack.c.bf16 %v359_v49, %v358_v48  ;;  %v360_v57 = vld [vmem:[%s4905_s0 + $0x13] sm:$0xff]  ;;  %v3405_v62 = vcombine.high %v4157_v3, %v1432_v47  ;;  %v148_v48 = vlaneseq }
  0x1f   :  { %3278 = vmatprep.subr.msk.bf16.mxu0 %vm89_vm0, %v3277_v15  ;;  %v490_v54 = vsel %vm89_vm0, %v3309_v50, 0  ;;  %v362_v58 = vpack.c.bf16 %v360_v57, %v360_v57  ;;  %v455_v59 = vld [vmem:[%s4905_s0 + $0x4] sm:$0xff]  ;;  %v456_v60 = vld [vmem:[%s4905_s0 + $0xc] sm:$0xff]  ;;  %v457_v63 = vld [vmem:[%s4905_s0 + $0x14] sm:$0xff] }
  0x20   :  { %v1458_v55 = vsel %vm89_vm0, %v3404_v51, 0  ;;  %v458_v61 = vpack.c.bf16 %v456_v60, %v455_v59  ;;  %v3399_v3 = vld [vmem:[%s4905_s0 + $0x20] sm:$0xff]  ;;  %v3415_v4 = vld [vmem:[%s4906_s1 + $0x38] sm:$0x33]  ;;  %v3401_v8 = vld [vmem:[%s4905_s0 + $0x30] sm:$0xff]  ;;  %v4446_v49 = vshrl.u32 %v148_v48, 7 }
  0x21   :  { %v3419_v6 = vcombine.high %v4184_v11, %v3415_v4  ;;  %v3418_v7 = vcombine.low %v4184_v11, %v3415_v4  ;;  %v3409_v11 = vld [vmem:[%s4905_s0 + $0x21] sm:$0xff]  ;;  %v3410_v12 = vld [vmem:[%s4905_s0 + $0x29] sm:$0xff]  ;;  %v3429_v13 = vld [vmem:[%s4906_s1 + $0x58] sm:$0x33] }
  0x22   :  { %207 = vmatpush1.bf16.msra.mxu0 %v199_v17  ;;  %v3433_v15 = vcombine.high %v4221_v23, %v3429_v13  ;;  %v3432_v16 = vcombine.low %v4221_v23, %v3429_v13  ;;  %v3411_v17 = vld [vmem:[%s4905_s0 + $0x31] sm:$0xff]  ;;  %v3437_v29 = vld [vmem:[%s4905_s0 + $0x23] sm:$0xff]  ;;  %v4449_v50 = vsub.s32 0, %v4446_v49  ;;  %v54_v51 = vld [vmem:[%s4907_s2] sm:$0x3] }
  0x23   :  { %301 = vmatprep.subr.bf16.mxu0 %v4206_v18  ;;  %v1565_v9 = vsel %vm89_vm0, %v3418_v7, 0  ;;  %v1535_v19 = vpack.c.bf16 %v3411_v17, %v3411_v17  ;;  %v3424_v21 = vld [vmem:[%s4905_s0 + $0x2a] sm:$0xff]  ;;  %v3443_v22 = vld [vmem:[%s4906_s1 + $0x78] sm:$0x33]  ;;  %v3851_v48 = vld [vmem:[%s4908_s3] sm:$0x3f]  }
  0x24   :  { %v1630_v23 = vpack.c.bf16 %v3424_v21, %v3423_v20  ;;  %v3447_v24 = vcombine.high %v4259_v35, %v3443_v22  ;;  %v3453_v41 = vld [vmem:[%s4905_s0 + $0x34] sm:$0xff]  ;;  %v4485_v20 = vld [vmem:[#allocation4 + $0x24] ss:$8 sps:$4 sm:$0xff]  }
  0x25   :  { %v4474_v17 = vld [vmem:[#allocation4] ss:$8 sps:$4 sm:$0xff]  }
  0x26   :  { %v4488_v21 = vld [vmem:[#allocation4 + $0x20] ss:$8 sps:$4 sm:$0xff]  }
  0x29   :  { %3279 = vmatmul.mubr.msk.bf16.vlgmr.msra.gmra.mrb[0].mxu0 %vm82_vm1, %v167_v25  ;;  %v3446_v25 = vcombine.low %v4259_v35, %v3443_v22  ;;  %v3439_v35 = vld [vmem:[%s4905_s0 + $0x33] sm:$0xff] }
  0x2a   :  { %302 = vmatpush1.bf16.msra.mxu0 %v4230_v26  ;;  %246 = vmatprep.mubr.bf16.mxu0 %v4065_v0  ;;  %v4491_v22 = vld [vmem:[#allocation4 + $0x34] ss:$8 sps:$4 sm:$0xff]  }
  0x2b   :  { %3289 = vmatprep.subr.msk.bf16.mxu0 %vm89_vm0, %v3288_v27  ;;  %v1757_v27 = vsel %vm89_vm0, %v3446_v25, 0 }
  0x2e   :  { %304 = vmatpush1.bf16.msra.mxu0 %v296_v31  ;;  %v3457_v31 = vld [vmem:[%s4906_s1 + $0x98] sm:$0x33] }
  0x2f   :  { %398 = vmatprep.subr.bf16.mxu0 %v4243_v30  ;;  %v3461_v33 = vcombine.high %v4287_v44, %v3457_v31  ;;  %v3460_v34 = vcombine.low %v4287_v44, %v3457_v31 }
  0x31   :  { %3280 = vmatmul.mubr.msk.bf16.gmra.mrb[4].mxu0 %vm82_vm1, %v168_v32  ;;  %v1853_v36 = vsel %vm89_vm0, %v3460_v34, 0 }
  0x32   :  { %333 = vmatprep.mubr.bf16.mxu0 %v4065_v0 }
  0x39   :  { %3290 = vmatmul.mubr.msk.bf16.vlgmr.msra.gmra.mrb[0].mxu0 %vm82_vm1, %v264_v38  ;;  %v3451_v38 = vld [vmem:[%s4905_s0 + $0x24] sm:$0xff] }
  0x3a   :  { %399 = vmatpush1.bf16.msra.mxu0 %v4267_v37  ;;  %343 = vmatprep.mubr.bf16.mxu0 %v4065_v0 }
  0x3b   :  { %3300 = vmatprep.subr.msk.bf16.mxu0 %vm89_vm0, %v3299_v39  ;;  %v3452_v39 = vld [vmem:[%s4905_s0 + $0x2c] sm:$0xff] }
  0x3c   :  { %v1822_v40 = vpack.c.bf16 %v3452_v39, %v3451_v38 }
  0x3e   :  { %401 = vmatpush1.bf16.msra.mxu0 %v393_v43  ;;  %v4066_v43 = vmov 0.0  }
  0x3f   :  { %495 = vmatprep.subr.bf16.mxu0 %v4278_v42  ;;  %3650 = vmatprep.subr.bf16.mxu1 %v4066_v43 }
  0x40   :  { %3654 = vmatprep.mubr.msk.bf16.mxu1 %vm4067_vm2, %v4066_v43 }
  0x41   :  { %3291 = vmatmul.mubr.msk.bf16.gmra.mrb[4].mxu0 %vm82_vm1, %v265_v46 }
  0x42   :  { %430 = vmatprep.mubr.bf16.mxu0 %v4065_v0 }
  0x49   :  { %3301 = vmatmul.mubr.msk.bf16.vlgmr.msra.gmra.mrb[0].mxu0 %vm82_vm1, %v361_v53  ;;  %v151_v53 = vrot.slane %v54_v51, %v4449_v50 }
  0x4a   :  { %496 = vmatpush1.bf16.msra.mxu0 %v4309_v52  ;;  %440 = vmatprep.mubr.bf16.mxu0 %v4065_v0 }
  0x4b   :  { %3311 = vmatprep.subr.msk.bf16.mxu0 %vm89_vm0, %v3310_v56 }
  0x4e   :  { %498 = vmatpush1.bf16.msra.mxu0 %v490_v54 }
  0x4f   :  { %1463 = vmatprep.subr.bf16.mxu0 %v4147_v1  ;;  %v459_v1 = vpack.c.bf16 %v457_v63, %v457_v63 }
  0x51   :  { %3302 = vmatmul.mubr.msk.bf16.gmra.mrb[4].mxu0 %vm82_vm1, %v362_v58 }
  0x52   :  { %527 = vmatprep.mubr.bf16.mxu0 %v4065_v0 }
  0x59   :  { %3312 = vmatmul.mubr.msk.bf16.vlgmr.msra.gmra.mrb[0].mxu0 %vm82_vm1, %v458_v61 }
  0x5a   :  { %1464 = vmatpush1.bf16.msra.mxu0 %v4152_v2  ;;  %537 = vmatprep.mubr.bf16.mxu0 %v4065_v0  ;;  %v3400_v2 = vld [vmem:[%s4905_s0 + $0x28] sm:$0xff] }
  0x5b   :  { %3406 = vmatprep.subr.msk.bf16.mxu0 %vm89_vm0, %v3405_v62  ;;  %v1427_v5 = vpack.c.bf16 %v3400_v2, %v3399_v3 }
  0x5e   :  { %1466 = vmatpush1.bf16.msra.mxu0 %v1458_v55 }
  0x5f   :  { %1570 = vmatprep.subr.bf16.mxu0 %v4179_v10  ;;  %v1428_v10 = vpack.c.bf16 %v3401_v8, %v3401_v8 }
  0x61   :  { %3313 = vmatmul.mubr.msk.bf16.gmra.mrb[4].mxu0 %vm82_vm1, %v459_v1 }
  0x62   :  { %1495 = vmatprep.mubr.bf16.mxu0 %v4065_v0 }
  0x69   :  { %3407 = vmatmul.mubr.msk.bf16.vlgmr.msra.gmra.mrb[8].mxu0 %vm82_vm1, %v1427_v5 }
  0x6a   :  { %1571 = vmatpush1.bf16.msra.mxu0 %v4193_v14  ;;  %1505 = vmatprep.mubr.bf16.mxu0 %v4065_v0  ;;  %v1534_v14 = vpack.c.bf16 %v3410_v12, %v3409_v11 }
  0x6b   :  { %3420 = vmatprep.subr.msk.bf16.mxu0 %vm89_vm0, %v3419_v6 }
  0x6e   :  { %1573 = vmatpush1.bf16.msra.mxu0 %v1565_v9 }
  0x6f   :  { %1666 = vmatprep.subr.bf16.mxu0 %v4206_v18  ;;  %v1661_v18 = vsel %vm89_vm0, %v3432_v16, 0  ;;  %v3850_v16 = vld [vmem:[%s4909_s4] sm:$0x3f]  }
  0x71   :  { %3408 = vmatmul.mubr.msk.bf16.gmra.mrb[12].mxu0 %vm82_vm1, %v1428_v10 }
  0x72   :  { %1602 = vmatprep.mubr.bf16.mxu0 %v4065_v0 }
  0x79   :  { %3421 = vmatmul.mubr.msk.bf16.vlgmr.msra.gmra.mrb[8].mxu0 %vm82_vm1, %v1534_v14  ;;  %v3849_v14 = vld [vmem:[%s4908_s3] sm:$0x3f]  }
  0x7a   :  { %1667 = vmatpush1.bf16.msra.mxu0 %v4230_v26  ;;  %1612 = vmatprep.mubr.bf16.mxu0 %v4065_v0  ;;  %v3425_v26 = vld [vmem:[%s4905_s0 + $0x32] sm:$0xff] }
  0x7b   :  { %3434 = vmatprep.subr.msk.bf16.mxu0 %vm89_vm0, %v3433_v15  ;;  %v1631_v28 = vpack.c.bf16 %v3425_v26, %v3425_v26  ;;  %v4469_v15 = vld [vmem:[#allocation4 + $0x4] ss:$8 sps:$4 sm:$0xff]  }
  0x7e   :  { %1669 = vmatpush1.bf16.msra.mxu0 %v1661_v18  ;;  %v4477_v18 = vld [vmem:[#allocation4 + $0x14] ss:$8 sps:$4 sm:$0xff]  }
  0x7f   :  { %1762 = vmatprep.subr.bf16.mxu0 %v4243_v30  ;;  %v3438_v30 = vld [vmem:[%s4905_s0 + $0x2b] sm:$0xff] }
  0x80   :  { %v1726_v32 = vpack.c.bf16 %v3438_v30, %v3437_v29 }
  0x81   :  { %3422 = vmatmul.mubr.msk.bf16.gmra.mrb[12].mxu0 %vm82_vm1, %v1535_v19  ;;  %v4481_v19 = vld [vmem:[#allocation4 + $0x10] ss:$8 sps:$4 sm:$0xff]  }
  0x82   :  { %1698 = vmatprep.mubr.bf16.mxu0 %v4065_v0 }
  0x89   :  { %3435 = vmatmul.mubr.msk.bf16.vlgmr.msra.gmra.mrb[8].mxu0 %vm82_vm1, %v1630_v23  ;;  %v4494_v23 = vld [vmem:[#allocation4 + $0x30] ss:$8 sps:$4 sm:$0xff]  }
  0x8a   :  { %1763 = vmatpush1.bf16.msra.mxu0 %v4267_v37  ;;  %1708 = vmatprep.mubr.bf16.mxu0 %v4065_v0  ;;  %v1727_v37 = vpack.c.bf16 %v3439_v35, %v3439_v35 }
  0x8b   :  { %3448 = vmatprep.subr.msk.bf16.mxu0 %vm89_vm0, %v3447_v24  ;;  %v1422_v24 = vld [vmem:[%s4907_s2] sm:$0x3] }
  0x8c   :  { %v1518_v25 = vrot.slane %v1422_v24, %v4449_v50 }
  0x8e   :  { %1765 = vmatpush1.bf16.msra.mxu0 %v1757_v27 }
  0x8f   :  { %1858 = vmatprep.subr.bf16.mxu0 %v4278_v42  ;;  %v1823_v42 = vpack.c.bf16 %v3453_v41, %v3453_v41 }
  0x91   :  { %3436 = vmatmul.mubr.msk.bf16.gmra.mrb[12].mxu0 %vm82_vm1, %v1631_v28 }
  0x92   :  { %1794 = vmatprep.mubr.bf16.mxu0 %v4065_v0 }
  0x99   :  { %3449 = vmatmul.mubr.msk.bf16.vlgmr.msra.gmra.mrb[8].mxu0 %vm82_vm1, %v1726_v32 }
  0x9a   :  { %1859 = vmatpush1.bf16.msra.mxu0 %v4309_v52  ;;  %1804 = vmatprep.mubr.bf16.mxu0 %v4065_v0  ;;  %v4455_v52 = vsub.s32 1, %v4446_v49 }
  0x9b   :  { %3462 = vmatprep.subr.msk.bf16.mxu0 %vm89_vm0, %v3461_v33 }
  0x9c   :  { %v155_v54 = vrot.slane %v54_v51, %v4455_v52  ;;  %v1522_v26 = vrot.slane %v1422_v24, %v4455_v52  ;;  %v4509_v51 = vld [vmem:[#allocation4 + $0x44] ss:$8 sps:$4 sm:$0xff]  }
  0x9e   :  { %1861 = vmatpush1.bf16.msra.mxu0 %v1853_v36 }
  0x9f   :  { %3666 = vmatprep.subr.bf16.mxu0 %v4066_v43 }
  0xa1   :  { %3450 = vmatmul.mubr.msk.bf16.gmra.mrb[12].mxu0 %vm82_vm1, %v1727_v37 }
  0xa2   :  { %1890 = vmatprep.mubr.bf16.mxu0 %v4065_v0 }
  0xa9   :  { %3463 = vmatmul.mubr.msk.bf16.vlgmr.msra.gmra.mrb[8].mxu0 %vm82_vm1, %v1822_v40 }
  0xaa   :  { %1900 = vmatprep.mubr.bf16.mxu0 %v4065_v0 }
  0xb1   :  { %3464 = vmatmul.mubr.msk.bf16.gmra.mrb[12].mxu0 %vm82_vm1, %v1823_v42 }
  0xb2   :  { %3670 = vmatprep.mubr.msk.bf16.mxu0 %vm4067_vm2, %v4066_v43 }
  0xf0   :  { %v140_v44 = vpop.f32.mrb[0].mxu1 }
  0xf1   :  { %v142_v45 = vpop.f32.mrb[1].mxu1  ;;  %v162_v1 = vadd.f32 %v151_v53, %v140_v44 }
  0xf2   :  { %v144_v46 = vpop.f32.mrb[2].mxu1  ;;  %v163_v2 = vadd.f32 %v155_v54, %v142_v45 }
  0xf3   :  { %v145_v47 = vpop.f32.mrb[3].mxu1 }
 0x12c   :  { %v529_v55 = vpop.f32.mrb[0].mxu0 }
 0x12d   :  { %v3698_v56 = vadd.f32 %v529_v55, %v151_v53  ;;  %v531_v57 = vpop.f32.mrb[1].mxu0  ;;  %v3852_v55 = vld [vmem:[%s4909_s4] sm:$0x3f]  }
 0x12e   :  { %v3699_v58 = vadd.f32 %v531_v57, %v155_v54  ;;  %v533_v59 = vpop.f32.mrb[2].mxu0  ;;  %v4528_v57 = vld [vmem:[#allocation4 + $0x64] ss:$8 sps:$4 sm:$0xff]  }
 0x12f   :  { %v3700_v60 = vadd.f32 %v533_v59, %v151_v53  ;;  %v535_v61 = vpop.f32.mrb[3].mxu0  ;;  %v4512_v53 = vld [vmem:[#allocation4 + $0x40] ss:$8 sps:$4 sm:$0xff]   ;;  %v4536_v59 = vld [vmem:[#allocation4 + $0x74] ss:$8 sps:$4 sm:$0xff]  }
 0x130   :  { %v552_v62 = vmax.f32 %v3698_v56, %v3699_v58  ;;  %v3701_v63 = vadd.f32 %v535_v61, %v155_v54  ;;  %v4519_v54 = vld [vmem:[#allocation4 + $0x54] ss:$8 sps:$4 sm:$0xff]   ;;  %v4524_v56 = vld [vmem:[#allocation4 + $0x50] ss:$8 sps:$4 sm:$0xff]   ;;  %v4531_v58 = vld [vmem:[#allocation4 + $0x60] ss:$8 sps:$4 sm:$0xff]  }
 0x131   :  { %v3879_v61 = vld [vmem:[#allocation4 + $0x84] ss:$8 sps:$4 sm:$0xff]  }
 0x132   :  { %v553_v3 = vmax.f32 %v3700_v60, %v3701_v63  ;;  %v4538_v60 = vld [vmem:[#allocation4 + $0x70] ss:$8 sps:$4 sm:$0xff]   ;;  %v3882_v63 = vld [vmem:[#allocation4 + $0x94] ss:$8 sps:$4 sm:$0xff]  }
 0x134   :  { %v555_v4 = vpack.c.bf16 %v553_v3, %v552_v62  ;;  %v539_v5 = vpop.f32.mrb[4].mxu0  ;;  %v3877_v62 = vld [vmem:[#allocation4 + $0x80] ss:$8 sps:$4 sm:$0xff]   ;;  %v3885_v3 = vld [vmem:[#allocation4 + $0xa4] ss:$8 sps:$4 sm:$0xff]  }
 0x135   :  { %v3703_v6 = vadd.f32 %v539_v5, %v162_v1  ;;  %v541_v7 = vpop.f32.mrb[5].mxu0  ;;  %v3880_v1 = vld [vmem:[#allocation4 + $0x90] ss:$8 sps:$4 sm:$0xff]  }
 0x136   :  { %v3705_v8 = vadd.f32 %v541_v7, %v163_v2  ;;  %v543_v9 = vpop.f32.mrb[6].mxu0  ;;  %3651 = vmatpush3.bf16.msra.mxu1 %v555_v4  ;;  %v3883_v2 = vld [vmem:[#allocation4 + $0xa0] ss:$8 sps:$4 sm:$0xff]   ;;  %v3886_v5 = vld [vmem:[#allocation4 + $0xb0] ss:$8 sps:$4 sm:$0xff]  }
 0x137   :  { %v544_v10 = vpop.f32.mrb[7].mxu0  ;;  %3652 = vmatprep.subr.bf16.mxu1 %v4066_v43  ;;  %v3889_v7 = vld [vmem:[#allocation4 + $0xc0] ss:$8 sps:$4 sm:$0xff]   ;;  %v3892_v9 = vld [vmem:[#allocation4 + $0xd0] ss:$8 sps:$4 sm:$0xff]  }
 0x138   :  { %v554_v11 = vmax.f32 %v3703_v6, %v3705_v8  ;;  %v3891_v6 = vld [vmem:[#allocation4 + $0xc4] ss:$8 sps:$4 sm:$0xff]   ;;  %v3894_v8 = vld [vmem:[#allocation4 + $0xd4] ss:$8 sps:$4 sm:$0xff]  }
 0x139   :  { %v3897_v10 = vld [vmem:[#allocation4 + $0xe4] ss:$8 sps:$4 sm:$0xff]  }
 0x13a   :  { %v556_v12 = vpack.c.bf16 %v554_v11, %v554_v11  ;;  %v3895_v11 = vld [vmem:[#allocation4 + $0xe0] ss:$8 sps:$4 sm:$0xff]  }
 0x13c   :  { %v570_v13 = vsel %vm568_vm3, %v556_v12, 0  ;;  %v3900_v12 = vld [vmem:[#allocation4 + $0xf4] ss:$8 sps:$4 sm:$0xff]  }
 0x13d   :  { %3653 = vmatpush3.bf16.msra.mxu1 %v570_v13 }
 0x13e   :  { %3658 = vmatprep.subr.bf16.mxu1 %v4066_v43 }
 0x140   :  { %3655 = vmatmul.mubr.msk.bf16.vlgmr.msra.gmra.mrb[4].mxu1 %vm564_vm4, %v3849_v14  ;;  %v3903_v14 = vld [vmem:[#allocation4 + $0x104] ss:$8 sps:$4 sm:$0xff]  }
 0x141   :  { %3659 = vmatpush3.bf16.msra.mxu1 %v555_v4  ;;  %3662 = vmatprep.mubr.msk.bf16.mxu1 %vm4067_vm2, %v4066_v43  ;;  %v3888_v4 = vld [vmem:[#allocation4 + $0xb4] ss:$8 sps:$4 sm:$0xff]  }
 0x142   :  { %3660 = vmatprep.subr.bf16.mxu1 %v4066_v43 }
 0x145   :  { %3661 = vmatpush3.bf16.msra.mxu1 %v570_v13  ;;  %v3898_v13 = vld [vmem:[#allocation4 + $0xf0] ss:$8 sps:$4 sm:$0xff]  }
 0x146   :  { %769 = vmatprep.subr.bf16.mxu1 %v4469_v15 }
 0x148   :  { %3663 = vmatmul.mubr.msk.bf16.vlgmr.msra.gmra.mrb[8].mxu1 %vm564_vm4, %v3850_v16 }
 0x149   :  { %770 = vmatpush1.bf16.msra.mxu1 %v4474_v17  ;;  %801 = vmatprep.mubr.bf16.mxu1 %v4065_v0 }
 0x14a   :  { %771 = vmatprep.subr.bf16.mxu1 %v4477_v18 }
 0x14d   :  { %772 = vmatpush1.bf16.msra.mxu1 %v4481_v19 }
 0x14e   :  { %773 = vmatprep.subr.bf16.mxu1 %v4485_v20 }
 0x151   :  { %774 = vmatpush1.bf16.msra.mxu1 %v4488_v21 }
 0x152   :  { %775 = vmatprep.subr.bf16.mxu1 %v4491_v22 }
 0x155   :  { %776 = vmatpush1.bf16.msra.mxu1 %v4494_v23 }
 0x156   :  { %777 = vmatprep.subr.bf16.mxu1 %v4509_v51 }
 0x159   :  { %778 = vmatpush1.bf16.msra.mxu1 %v4512_v53 }
 0x15a   :  { %779 = vmatprep.subr.bf16.mxu1 %v4519_v54 }
 0x15d   :  { %780 = vmatpush1.bf16.msra.mxu1 %v4524_v56 }
 0x15e   :  { %781 = vmatprep.subr.bf16.mxu1 %v4528_v57 }
 0x161   :  { %782 = vmatpush1.bf16.msra.mxu1 %v4531_v58 }
 0x162   :  { %783 = vmatprep.subr.bf16.mxu1 %v4536_v59 }
 0x165   :  { %784 = vmatpush1.bf16.msra.mxu1 %v4538_v60 }
 0x166   :  { %922 = vmatprep.subr.bf16.mxu1 %v3879_v61 }
 0x17c   :  { %v1892_v27 = vpop.f32.mrb[8].mxu0 }
 0x17d   :  { %v3708_v28 = vadd.f32 %v1892_v27, %v1518_v25  ;;  %v1894_v29 = vpop.f32.mrb[9].mxu0 }
 0x17e   :  { %v3709_v30 = vadd.f32 %v1894_v29, %v1522_v26  ;;  %v1896_v31 = vpop.f32.mrb[10].mxu0 }
 0x17f   :  { %v3710_v32 = vadd.f32 %v1896_v31, %v1518_v25  ;;  %v1898_v33 = vpop.f32.mrb[11].mxu0 }
 0x180   :  { %v1915_v34 = vmax.f32 %v3708_v28, %v3709_v30  ;;  %v3711_v35 = vadd.f32 %v1898_v33, %v1522_v26 }
 0x182   :  { %v1916_v36 = vmax.f32 %v3710_v32, %v3711_v35 }
 0x184   :  { %v1918_v37 = vpack.c.bf16 %v1916_v36, %v1915_v34  ;;  %v1902_v38 = vpop.f32.mrb[12].mxu0 }
 0x185   :  { %v3712_v39 = vadd.f32 %v1902_v38, %v1518_v25  ;;  %v1904_v40 = vpop.f32.mrb[13].mxu0 }
 0x186   :  { %v3713_v41 = vadd.f32 %v1904_v40, %v1522_v26  ;;  %v1906_v42 = vpop.f32.mrb[14].mxu0  ;;  %3667 = vmatpush3.bf16.msra.mxu0 %v1918_v37  ;;  %v4548_v40 = vld [vmem:[#allocation4 + $0x110] ss:$8 sps:$4 sm:$0xff]  }
 0x187   :  { %v1907_v44 = vpop.f32.mrb[15].mxu0  ;;  %3668 = vmatprep.subr.bf16.mxu0 %v4066_v43  ;;  %v4555_v42 = vld [vmem:[#allocation4 + $0x120] ss:$8 sps:$4 sm:$0xff]  }
 0x188   :  { %v1917_v45 = vmax.f32 %v3712_v39, %v3713_v41  ;;  %v4545_v39 = vld [vmem:[#allocation4 + $0x114] ss:$8 sps:$4 sm:$0xff]   ;;  %v4552_v41 = vld [vmem:[#allocation4 + $0x124] ss:$8 sps:$4 sm:$0xff]  }
 0x189   :  { %v4558_v44 = vld [vmem:[#allocation4 + $0x134] ss:$8 sps:$4 sm:$0xff]  }
 0x18a   :  { %v1919_v46 = vpack.c.bf16 %v1917_v45, %v1917_v45  ;;  %v4561_v45 = vld [vmem:[#allocation4 + $0x130] ss:$8 sps:$4 sm:$0xff]  }
 0x18c   :  { %v1931_v47 = vsel %vm568_vm3, %v1919_v46, 0  ;;  %v4564_v46 = vld [vmem:[#allocation4 + $0x144] ss:$8 sps:$4 sm:$0xff]  }
 0x18d   :  { %3669 = vmatpush3.bf16.msra.mxu0 %v1931_v47 }
 0x18e   :  { %3674 = vmatprep.subr.bf16.mxu0 %v4066_v43 }
 0x190   :  { %3671 = vmatmul.mubr.msk.bf16.vlgmr.msra.gmra.mrb[16].mxu0 %vm564_vm4, %v3851_v48  ;;  %v4570_v48 = vld [vmem:[#allocation4 + $0x154] ss:$8 sps:$4 sm:$0xff]  }
 0x191   :  { %3675 = vmatpush3.bf16.msra.mxu0 %v1918_v37  ;;  %3678 = vmatprep.mubr.msk.bf16.mxu0 %vm4067_vm2, %v4066_v43  ;;  %v4543_v37 = vld [vmem:[#allocation4 + $0x100] ss:$8 sps:$4 sm:$0xff]  }
 0x192   :  { %3676 = vmatprep.subr.bf16.mxu0 %v4066_v43 }
 0x195   :  { %3677 = vmatpush3.bf16.msra.mxu0 %v1931_v47  ;;  %v4567_v47 = vld [vmem:[#allocation4 + $0x140] ss:$8 sps:$4 sm:$0xff]  }
 0x196   :  { %2282 = vmatprep.subr.bf16.mxu0 %v3879_v61  ;;  %v4576_v61 = vld [vmem:[#allocation4 + $0x164] ss:$8 sps:$4 sm:$0xff]  }
 0x198   :  { %3679 = vmatmul.mubr.msk.bf16.vlgmr.msra.gmra.mrb[20].mxu0 %vm564_vm4, %v3852_v55  ;;  %v4573_v55 = vld [vmem:[#allocation4 + $0x150] ss:$8 sps:$4 sm:$0xff]  }
 0x199   :  { %2314 = vmatprep.mubr.bf16.mxu0 %v4065_v0  ;;  %2283 = vmatpush1.bf16.msra.mxu0 %v3877_v62 }
 0x19a   :  { %2284 = vmatprep.subr.bf16.mxu0 %v3882_v63 }
 0x19d   :  { %2285 = vmatpush1.bf16.msra.mxu0 %v3880_v1 }
 0x19e   :  { %2286 = vmatprep.subr.bf16.mxu0 %v3885_v3 }
 0x1a1   :  { %2287 = vmatpush1.bf16.msra.mxu0 %v3883_v2 }
 0x1a2   :  { %2288 = vmatprep.subr.bf16.mxu0 %v3888_v4 }
 0x1a5   :  { %2289 = vmatpush1.bf16.msra.mxu0 %v3886_v5 }
 0x1a6   :  { %2290 = vmatprep.subr.bf16.mxu0 %v3891_v6 }
 0x1a9   :  { %2291 = vmatpush1.bf16.msra.mxu0 %v3889_v7 }
 0x1aa   :  { %2292 = vmatprep.subr.bf16.mxu0 %v3894_v8 }
 0x1ad   :  { %2293 = vmatpush1.bf16.msra.mxu0 %v3892_v9 }
 0x1ae   :  { %2294 = vmatprep.subr.bf16.mxu0 %v3897_v10 }
 0x1b1   :  { %2295 = vmatpush1.bf16.msra.mxu0 %v3895_v11 }
 0x1b2   :  { %2296 = vmatprep.subr.bf16.mxu0 %v3900_v12 }
 0x1b5   :  { %2297 = vmatpush1.bf16.msra.mxu0 %v3898_v13 }
 0x1b6   :  { %2423 = vmatprep.subr.bf16.mxu0 %v3903_v14 }
 0x213   :  { %v606_v16 = vpop.f32.mrb[4].mxu1 }
 0x214   :  { %v3656_v24 = vpop.f32.mrb[5].mxu1 }
 0x215   :  { %v609_v25 = vpop.f32.mrb[6].mxu1  ;;  %v4610_v24 = vld [vmem:[#allocation4 + $0x1b0] ss:$8 sps:$4 sm:$0xff]  }
 0x216   :  { %v3657_v26 = vpop.f32.mrb[7].mxu1 }
 0x21b   :  { %v657_v27 = vpop.f32.mrb[8].mxu1 }
 0x21c   :  { %v664_v28 = vmax.f32 %v606_v16, %v657_v27  ;;  %v3664_v29 = vpop.f32.mrb[9].mxu1  ;;  %v4613_v27 = vld [vmem:[#allocation4 + $0x1c4] ss:$8 sps:$4 sm:$0xff]  }
 0x21d   :  { %v660_v30 = vpop.f32.mrb[10].mxu1 }
 0x21e   :  { %v666_v31 = vmax.f32 %v664_v28, 0.0  ;;  %v665_v32 = vmax.f32 %v609_v25, %v660_v30  ;;  %v3665_v33 = vpop.f32.mrb[11].mxu1 }
 0x220   :  { %668 = vst [vmem:[#allocation2] sm:$0xff] %v666_v31  ;;  %v667_v34 = vmax.f32 %v665_v32, 0.0  ;;  %v672_v35 = vpack.c.bf16 %v666_v31, %v666_v31 }
 0x222   :  { %669 = vst [vmem:[#allocation2 + $0x8] sm:$0xf] %v667_v34  ;;  %802 = vmatmul.mubr.bf16.vlgmr.msra.gmra.mrb[12].mxu1 %v672_v35  ;;  %v4620_v34 = vld [vmem:[#allocation4 + $0x1c0] ss:$8 sps:$4 sm:$0xff]  }
 0x223   :  { %923 = vmatpush1.bf16.msra.mxu1 %v3877_v62  ;;  %954 = vmatprep.mubr.bf16.mxu1 %v4065_v0  ;;  %v4579_v62 = vld [vmem:[#allocation4 + $0x160] ss:$8 sps:$4 sm:$0xff]  }
 0x224   :  { %924 = vmatprep.subr.bf16.mxu1 %v3882_v63  ;;  %v4582_v63 = vld [vmem:[#allocation4 + $0x174] ss:$8 sps:$4 sm:$0xff]  }
 0x227   :  { %925 = vmatpush1.bf16.msra.mxu1 %v3880_v1  ;;  %v4585_v1 = vld [vmem:[#allocation4 + $0x170] ss:$8 sps:$4 sm:$0xff]  }
 0x228   :  { %926 = vmatprep.subr.bf16.mxu1 %v3885_v3  ;;  %v4588_v3 = vld [vmem:[#allocation4 + $0x184] ss:$8 sps:$4 sm:$0xff]  }
 0x229   :  { %v823_v36 = vld [vmem:[#allocation2 + $0x1] sm:$0xff] }
 0x22a   :  { %v824_v38 = vpack.c.bf16 %v823_v36, %v823_v36  ;;  %v1107_v32 = vld [vmem:[#allocation2 + $0x3] sm:$0xff]  ;;  %v4624_v36 = vld [vmem:[#allocation4 + $0x1d4] ss:$8 sps:$4 sm:$0xff]  }
 0x22b   :  { %927 = vmatpush1.bf16.msra.mxu1 %v3883_v2  ;;  %v965_v2 = vld [vmem:[#allocation2 + $0x2] sm:$0xff] }
 0x22c   :  { %928 = vmatprep.subr.bf16.mxu1 %v3888_v4  ;;  %v4591_v4 = vld [vmem:[#allocation4 + $0x180] ss:$8 sps:$4 sm:$0xff]   ;;  %v4617_v33 = vld [vmem:[#allocation2 + $0x4] sm:$0xff] }
 0x22f   :  { %929 = vmatpush1.bf16.msra.mxu1 %v3886_v5  ;;  %v966_v5 = vpack.c.bf16 %v965_v2, %v965_v2  ;;  %v4630_v2 = vld [vmem:[#allocation4 + $0x1e4] ss:$8 sps:$4 sm:$0xff]  }
 0x230   :  { %930 = vmatprep.subr.bf16.mxu1 %v3891_v6  ;;  %v4594_v6 = vld [vmem:[#allocation4 + $0x194] ss:$8 sps:$4 sm:$0xff]  }
 0x233   :  { %931 = vmatpush1.bf16.msra.mxu1 %v3889_v7 }
 0x234   :  { %932 = vmatprep.subr.bf16.mxu1 %v3894_v8  ;;  %v4597_v8 = vld [vmem:[#allocation4 + $0x190] ss:$8 sps:$4 sm:$0xff]  }
 0x237   :  { %933 = vmatpush1.bf16.msra.mxu1 %v3892_v9 }
 0x238   :  { %934 = vmatprep.subr.bf16.mxu1 %v3897_v10  ;;  %v4601_v10 = vld [vmem:[#allocation4 + $0x1a4] ss:$8 sps:$4 sm:$0xff]  }
 0x23b   :  { %935 = vmatpush1.bf16.msra.mxu1 %v3895_v11 }
 0x23c   :  { %936 = vmatprep.subr.bf16.mxu1 %v3900_v12 }
 0x23f   :  { %937 = vmatpush1.bf16.msra.mxu1 %v3898_v13  ;;  %v4604_v13 = vld [vmem:[#allocation4 + $0x1a0] ss:$8 sps:$4 sm:$0xff]  }
 0x240   :  { %1064 = vmatprep.subr.bf16.mxu1 %v3903_v14  ;;  %v4607_v14 = vld [vmem:[#allocation4 + $0x1b4] ss:$8 sps:$4 sm:$0xff]  }
 0x242   :  { %955 = vmatmul.mubr.bf16.vlgmr.msra.gmra.mrb[12].mxu1 %v824_v38  ;;  %v4627_v38 = vld [vmem:[#allocation4 + $0x1d0] ss:$8 sps:$4 sm:$0xff]  }
 0x243   :  { %1065 = vmatpush1.bf16.msra.mxu1 %v4543_v37  ;;  %1096 = vmatprep.mubr.bf16.mxu1 %v4065_v0 }
 0x244   :  { %1066 = vmatprep.subr.bf16.mxu1 %v4545_v39 }
 0x247   :  { %1067 = vmatpush1.bf16.msra.mxu1 %v4548_v40 }
 0x248   :  { %1068 = vmatprep.subr.bf16.mxu1 %v4552_v41 }
 0x24b   :  { %1069 = vmatpush1.bf16.msra.mxu1 %v4555_v42 }
 0x24c   :  { %1070 = vmatprep.subr.bf16.mxu1 %v4558_v44 }
 0x24f   :  { %1071 = vmatpush1.bf16.msra.mxu1 %v4561_v45 }
 0x250   :  { %1072 = vmatprep.subr.bf16.mxu1 %v4564_v46 }
 0x253   :  { %1073 = vmatpush1.bf16.msra.mxu1 %v4567_v47 }
 0x254   :  { %1074 = vmatprep.subr.bf16.mxu1 %v4570_v48 }
 0x257   :  { %1075 = vmatpush1.bf16.msra.mxu1 %v4573_v55 }
 0x258   :  { %1076 = vmatprep.subr.bf16.mxu1 %v4576_v61 }
 0x25b   :  { %1077 = vmatpush1.bf16.msra.mxu1 %v4579_v62 }
 0x25c   :  { %1078 = vmatprep.subr.bf16.mxu1 %v4582_v63 }
 0x25f   :  { %1079 = vmatpush1.bf16.msra.mxu1 %v4585_v1 }
 0x260   :  { %1206 = vmatprep.subr.bf16.mxu1 %v4588_v3 }
 0x262   :  { %1097 = vmatmul.mubr.bf16.vlgmr.msra.gmra.mrb[12].mxu1 %v966_v5  ;;  %v4633_v5 = vld [vmem:[#allocation4 + $0x1e0] ss:$8 sps:$4 sm:$0xff]  }
 0x263   :  { %v1967_v7 = vpop.f32.mrb[16].mxu0  ;;  %1207 = vmatpush1.bf16.msra.mxu1 %v4591_v4  ;;  %1238 = vmatprep.mubr.bf16.mxu1 %v4065_v0 }
 0x264   :  { %v3672_v9 = vpop.f32.mrb[17].mxu0  ;;  %1208 = vmatprep.subr.bf16.mxu1 %v4594_v6 }
 0x265   :  { %v1970_v11 = vpop.f32.mrb[18].mxu0 }
 0x266   :  { %v3673_v12 = vpop.f32.mrb[19].mxu0 }
 0x267   :  { %1209 = vmatpush1.bf16.msra.mxu1 %v4597_v8  ;;  %v4639_v12 = vld [vmem:[#allocation4 + $0x1f0] ss:$8 sps:$4 sm:$0xff]  }
 0x268   :  { %1210 = vmatprep.subr.bf16.mxu1 %v4601_v10 }
 0x26b   :  { %v2018_v16 = vpop.f32.mrb[20].mxu0  ;;  %1211 = vmatpush1.bf16.msra.mxu1 %v4604_v13 }
 0x26c   :  { %v2025_v25 = vmax.f32 %v1967_v7, %v2018_v16  ;;  %v3680_v26 = vpop.f32.mrb[21].mxu0  ;;  %1212 = vmatprep.subr.bf16.mxu1 %v4607_v14  ;;  %v4636_v7 = vld [vmem:[#allocation4 + $0x1f4] ss:$8 sps:$4 sm:$0xff]   ;;  %v4642_v16 = vld [vmem:[#allocation4 + $0x204] ss:$8 sps:$4 sm:$0xff]  }
 0x26d   :  { %v2021_v28 = vpop.f32.mrb[22].mxu0  ;;  %v1108_v26 = vpack.c.bf16 %v1107_v32, %v1107_v32  ;;  %v3970_v32 = vld [vmem:[#allocation4 + $0x270] ss:$8 sps:$4 sm:$0xff]  }
 0x26e   :  { %v4615_v29 = vmax.f32 %v2025_v25, 0.0  ;;  %v2026_v30 = vmax.f32 %v1970_v11, %v2021_v28  ;;  %v3681_v31 = vpop.f32.mrb[23].mxu0  ;;  %v4648_v25 = vld [vmem:[#allocation4 + $0x200] ss:$8 sps:$4 sm:$0xff]   ;;  %v4651_v28 = vld [vmem:[#allocation4 + $0x214] ss:$8 sps:$4 sm:$0xff]  }
 0x26f   :  { %1213 = vmatpush1.bf16.msra.mxu1 %v4610_v24  ;;  %v4697_v31 = vld [vmem:[#allocation4 + $0x260] ss:$8 sps:$4 sm:$0xff]  }
 0x270   :  { %2029 = vst [vmem:[#allocation2] sm:$0xff] %v4615_v29  ;;  %v2028_v35 = vmax.f32 %v2026_v30, 0.0  ;;  %1214 = vmatprep.subr.bf16.mxu1 %v4613_v27  ;;  %v4673_v30 = vld [vmem:[#allocation4 + $0x230] ss:$8 sps:$4 sm:$0xff]  }
 0x272   :  { %2030 = vst [vmem:[#allocation2 + $0x8] sm:$0xf] %v2028_v35 }
 0x273   :  { %1215 = vmatpush1.bf16.msra.mxu1 %v4620_v34 }
 0x274   :  { %1216 = vmatprep.subr.bf16.mxu1 %v4624_v36 }
 0x277   :  { %1217 = vmatpush1.bf16.msra.mxu1 %v4627_v38 }
 0x278   :  { %1218 = vmatprep.subr.bf16.mxu1 %v4630_v2 }
 0x279   :  { %v2184_v9 = vld [vmem:[#allocation2 + $0x1] sm:$0xff] }
 0x27a   :  { %v2185_v11 = vpack.c.bf16 %v2184_v9, %v2184_v9 }
 0x27b   :  { %1219 = vmatpush1.bf16.msra.mxu1 %v4633_v5 }
 0x27c   :  { %2315 = vmatmul.mubr.bf16.vlgmr.msra.gmra.mrb[24].mxu0 %v2185_v11  ;;  %1220 = vmatprep.subr.bf16.mxu1 %v4636_v7 }
 0x27d   :  { %2424 = vmatpush1.bf16.msra.mxu0 %v4543_v37  ;;  %2455 = vmatprep.mubr.bf16.mxu0 %v4065_v0  ;;  %v4656_v37 = vld [vmem:[#allocation4 + $0x210] ss:$8 sps:$4 sm:$0xff]  }
 0x27e   :  { %2425 = vmatprep.subr.bf16.mxu0 %v4545_v39  ;;  %v4660_v39 = vld [vmem:[#allocation4 + $0x224] ss:$8 sps:$4 sm:$0xff]  }
 0x27f   :  { %1221 = vmatpush1.bf16.msra.mxu1 %v4639_v12 }
 0x280   :  { %1348 = vmatprep.subr.bf16.mxu1 %v4642_v16 }
 0x281   :  { %2426 = vmatpush1.bf16.msra.mxu0 %v4548_v40  ;;  %v4665_v40 = vld [vmem:[#allocation4 + $0x220] ss:$8 sps:$4 sm:$0xff]  }
 0x282   :  { %2427 = vmatprep.subr.bf16.mxu0 %v4552_v41  ;;  %1239 = vmatmul.mubr.bf16.vlgmr.msra.gmra.mrb[12].mxu1 %v1108_v26  ;;  %v4668_v41 = vld [vmem:[#allocation4 + $0x234] ss:$8 sps:$4 sm:$0xff]  }
 0x283   :  { %1349 = vmatpush1.bf16.msra.mxu1 %v4648_v25  ;;  %1380 = vmatprep.mubr.bf16.mxu1 %v4065_v0 }
 0x284   :  { %1350 = vmatprep.subr.bf16.mxu1 %v4651_v28 }
 0x285   :  { %2428 = vmatpush1.bf16.msra.mxu0 %v4555_v42  ;;  %v4676_v42 = vld [vmem:[#allocation4 + $0x244] ss:$8 sps:$4 sm:$0xff]  }
 0x286   :  { %2429 = vmatprep.subr.bf16.mxu0 %v4558_v44  ;;  %v4681_v44 = vld [vmem:[#allocation4 + $0x240] ss:$8 sps:$4 sm:$0xff]  }
 0x287   :  { %1351 = vmatpush1.bf16.msra.mxu1 %v4656_v37 }
 0x288   :  { %1352 = vmatprep.subr.bf16.mxu1 %v4660_v39 }
 0x289   :  { %2430 = vmatpush1.bf16.msra.mxu0 %v4561_v45  ;;  %v4684_v45 = vld [vmem:[#allocation4 + $0x254] ss:$8 sps:$4 sm:$0xff]  }
 0x28a   :  { %2431 = vmatprep.subr.bf16.mxu0 %v4564_v46  ;;  %v4689_v46 = vld [vmem:[#allocation4 + $0x250] ss:$8 sps:$4 sm:$0xff]  }
 0x28b   :  { %1353 = vmatpush1.bf16.msra.mxu1 %v4665_v40 }
 0x28c   :  { %1354 = vmatprep.subr.bf16.mxu1 %v4668_v41 }
 0x28d   :  { %2432 = vmatpush1.bf16.msra.mxu0 %v4567_v47  ;;  %v4692_v47 = vld [vmem:[#allocation4 + $0x264] ss:$8 sps:$4 sm:$0xff]  }
 0x28e   :  { %2433 = vmatprep.subr.bf16.mxu0 %v4570_v48  ;;  %v2325_v48 = vld [vmem:[#allocation2 + $0x2] sm:$0xff] }
 0x28f   :  { %1355 = vmatpush1.bf16.msra.mxu1 %v4673_v30 }
 0x290   :  { %1356 = vmatprep.subr.bf16.mxu1 %v4676_v42 }
 0x291   :  { %2434 = vmatpush1.bf16.msra.mxu0 %v4573_v55  ;;  %v4700_v55 = vld [vmem:[#allocation4 + $0x274] ss:$8 sps:$4 sm:$0xff]  }
 0x292   :  { %2435 = vmatprep.subr.bf16.mxu0 %v4576_v61  ;;  %v2326_v61 = vpack.c.bf16 %v2325_v48, %v2325_v48 }
 0x293   :  { %1357 = vmatpush1.bf16.msra.mxu1 %v4681_v44 }
 0x294   :  { %1358 = vmatprep.subr.bf16.mxu1 %v4684_v45 }
 0x295   :  { %2436 = vmatpush1.bf16.msra.mxu0 %v4579_v62  ;;  %v1250_v62 = vpack.c.bf16 %v4617_v33, %v4617_v33 }
 0x296   :  { %2437 = vmatprep.subr.bf16.mxu0 %v4582_v63  ;;  %v3985_v63 = vld [vmem:[%s4912_s7 + $0x70] sm:$0xff]  }
 0x297   :  { %1359 = vmatpush1.bf16.msra.mxu1 %v4689_v46 }
 0x298   :  { %1360 = vmatprep.subr.bf16.mxu1 %v4692_v47 }
 0x299   :  { %2438 = vmatpush1.bf16.msra.mxu0 %v4585_v1  ;;  %v3986_v1 = vld [vmem:[%s4912_s7 + $0x30] sm:$0xff]  }
 0x29a   :  { %2564 = vmatprep.subr.bf16.mxu0 %v4588_v3  ;;  %v3987_v3 = vld [vmem:[%s4912_s7 + $0x78] sm:$0xff]  }
 0x29b   :  { %1361 = vmatpush1.bf16.msra.mxu1 %v4697_v31 }
 0x29c   :  { %2456 = vmatmul.mubr.bf16.vlgmr.msra.gmra.mrb[24].mxu0 %v2326_v61  ;;  %1362 = vmatprep.subr.bf16.mxu1 %v4700_v55 }
 0x29d   :  { %2565 = vmatpush1.bf16.msra.mxu0 %v4591_v4  ;;  %2596 = vmatprep.mubr.bf16.mxu0 %v4065_v0  ;;  %v3988_v4 = vld [vmem:[%s4912_s7 + $0x38] sm:$0xff]  }
 0x29e   :  { %2566 = vmatprep.subr.bf16.mxu0 %v4594_v6  ;;  %v3989_v6 = vld [vmem:[%s4912_s7 + $0xc0] sm:$0xff]  }
 0x29f   :  { %1363 = vmatpush1.bf16.msra.mxu1 %v3970_v32 }
 0x2a0   :  { %2130 = vmatprep.subr.bf16.mxu1 %v4469_v15  ;;  %v2466_v15 = vld [vmem:[#allocation2 + $0x3] sm:$0xff] }
 0x2a1   :  { %2567 = vmatpush1.bf16.msra.mxu0 %v4597_v8  ;;  %v670_v8 = vld [vmem:[%s4911_s6] sm:$0x3] }
 0x2a2   :  { %2568 = vmatprep.subr.bf16.mxu0 %v4601_v10  ;;  %1381 = vmatmul.mubr.bf16.vlgmr.msra.gmra.mrb[12].mxu1 %v1250_v62  ;;  %v814_v10 = vrot.slane %v670_v8, %v4449_v50 }
 0x2a3   :  { %2131 = vmatpush1.bf16.msra.mxu1 %v4474_v17  ;;  %2162 = vmatprep.mubr.bf16.mxu1 %v4065_v0  ;;  %v2467_v17 = vpack.c.bf16 %v2466_v15, %v2466_v15 }
 0x2a4   :  { %2132 = vmatprep.subr.bf16.mxu1 %v4477_v18  ;;  %v2033_v18 = vpack.c.bf16 %v4615_v29, %v4615_v29 }
 0x2a5   :  { %2569 = vmatpush1.bf16.msra.mxu0 %v4604_v13  ;;  %v818_v13 = vrot.slane %v670_v8, %v4455_v52  ;;  %v3999_v8 = vld [vmem:[%s4912_s7 + $0xa0] sm:$0xff]  }
 0x2a6   :  { %2570 = vmatprep.subr.bf16.mxu0 %v4607_v14  ;;  %v4068_v14 = vmov 1983009808  }
 0x2a7   :  { %2133 = vmatpush1.bf16.msra.mxu1 %v4481_v19 }
 0x2a8   :  { %2134 = vmatprep.subr.bf16.mxu1 %v4485_v20  ;;  %v3973_v20 = vld [vmem:[%s4912_s7 + $0x40] sm:$0xff]  }
 0x2a9   :  { %2571 = vmatpush1.bf16.msra.mxu0 %v4610_v24  ;;  %v1400_v24 = vunpack.c.l.s4 %v4068_v14  ;;  %v4002_v14 = vld [vmem:[%s4912_s7 + $0xf0] sm:$0xff]  }
 0x2aa   :  { %2572 = vmatprep.subr.bf16.mxu0 %v4613_v27 }
 0x2ab   :  { %2135 = vmatpush1.bf16.msra.mxu1 %v4488_v21  ;;  %v3974_v21 = vld [vmem:[%s4912_s7] sm:$0xff]  }
 0x2ac   :  { %2136 = vmatprep.subr.bf16.mxu1 %v4491_v22  ;;  %v3975_v22 = vld [vmem:[%s4912_s7 + $0x48] sm:$0xff]  }
 0x2ad   :  { %2573 = vmatpush1.bf16.msra.mxu0 %v4620_v34 }
 0x2ae   :  { %2574 = vmatprep.subr.bf16.mxu0 %v4624_v36 }
 0x2af   :  { %2137 = vmatpush1.bf16.msra.mxu1 %v4494_v23  ;;  %v3976_v23 = vld [vmem:[%s4912_s7 + $0x8] sm:$0xff]  }
 0x2b0   :  { %2138 = vmatprep.subr.bf16.mxu1 %v4509_v51  ;;  %v3977_v51 = vld [vmem:[%s4912_s7 + $0x50] sm:$0xff]  }
 0x2b1   :  { %2575 = vmatpush1.bf16.msra.mxu0 %v4627_v38  ;;  %v1401_v38 = vunpack.c.0.s8 %v1400_v24  ;;  %v4003_v24 = vld [vmem:[%s4912_s7 + $0xb0] sm:$0xff]  }
 0x2b2   :  { %2576 = vmatprep.subr.bf16.mxu0 %v4630_v2 }
 0x2b3   :  { %2139 = vmatpush1.bf16.msra.mxu1 %v4512_v53  ;;  %v3978_v53 = vld [vmem:[%s4912_s7 + $0x10] sm:$0xff]  }
 0x2b4   :  { %2140 = vmatprep.subr.bf16.mxu1 %v4519_v54  ;;  %v3979_v54 = vld [vmem:[%s4912_s7 + $0x58] sm:$0xff]  }
 0x2b5   :  { %2577 = vmatpush1.bf16.msra.mxu0 %v4633_v5 }
 0x2b6   :  { %2578 = vmatprep.subr.bf16.mxu0 %v4636_v7  ;;  %v1404_v7 = vsub.s32 %v1401_v38, %v4446_v49  ;;  %v4009_v38 = vld [vmem:[%s4914_s9 + $0x18] ss:$0 sps:$4 sm:$0x11]  }
 0x2b7   :  { %2141 = vmatpush1.bf16.msra.mxu1 %v4524_v56  ;;  %v3980_v56 = vld [vmem:[%s4912_s7 + $0x18] sm:$0xff]  }
 0x2b8   :  { %2142 = vmatprep.subr.bf16.mxu1 %v4528_v57  ;;  %v3981_v57 = vld [vmem:[%s4912_s7 + $0x60] sm:$0xff]  }
 0x2b9   :  { %2579 = vmatpush1.bf16.msra.mxu0 %v4639_v12 }
 0x2ba   :  { %2705 = vmatprep.subr.bf16.mxu0 %v4642_v16 }
 0x2bb   :  { %2143 = vmatpush1.bf16.msra.mxu1 %v4531_v58  ;;  %v3982_v58 = vld [vmem:[%s4912_s7 + $0x20] sm:$0xff]  }
 0x2bc   :  { %2597 = vmatmul.mubr.bf16.vlgmr.msra.gmra.mrb[24].mxu0 %v2467_v17  ;;  %2144 = vmatprep.subr.bf16.mxu1 %v4536_v59  ;;  %v3983_v59 = vld [vmem:[%s4912_s7 + $0x68] sm:$0xff]  }
 0x2bd   :  { %2706 = vmatpush1.bf16.msra.mxu0 %v4648_v25  ;;  %2737 = vmatprep.mubr.bf16.mxu0 %v4065_v0  ;;  %v2607_v0 = vld [vmem:[#allocation2 + $0x4] sm:$0xff] }
 0x2be   :  { %2707 = vmatprep.subr.bf16.mxu0 %v4651_v28  ;;  %v2608_v19 = vpack.c.bf16 %v2607_v0, %v2607_v0 }
 0x2bf   :  { %2145 = vmatpush1.bf16.msra.mxu1 %v4538_v60  ;;  %v3984_v60 = vld [vmem:[%s4912_s7 + $0x28] sm:$0xff]  }
 0x2c0   :  { %3601 = vmatprep.subr.bf16.mxu1 %v3973_v20 }
 0x2c1   :  { %2708 = vmatpush1.bf16.msra.mxu0 %v4656_v37 }
 0x2c2   :  { %2709 = vmatprep.subr.bf16.mxu0 %v4660_v39  ;;  %2163 = vmatmul.mubr.bf16.vlgmr.msra.gmra.mrb[16].mxu1 %v2033_v18 }
 0x2c3   :  { %3602 = vmatpush3.bf16.msra.mxu1 %v3974_v21 }
 0x2c4   :  { %3603 = vmatprep.subr.bf16.mxu1 %v3975_v22 }
 0x2c5   :  { %2710 = vmatpush1.bf16.msra.mxu0 %v4665_v40 }
 0x2c6   :  { %2711 = vmatprep.subr.bf16.mxu0 %v4668_v41 }
 0x2c7   :  { %3604 = vmatpush3.bf16.msra.mxu1 %v3976_v23 }
 0x2c8   :  { %3605 = vmatprep.subr.bf16.mxu1 %v3977_v51 }
 0x2c9   :  { %2712 = vmatpush1.bf16.msra.mxu0 %v4673_v30  ;;  %v2031_v30 = vld [vmem:[%s4911_s6] sm:$0x3] }
 0x2ca   :  { %2713 = vmatprep.subr.bf16.mxu0 %v4676_v42  ;;  %v2175_v49 = vrot.slane %v2031_v30, %v4449_v50  ;;  %v2179_v42 = vrot.slane %v2031_v30, %v4455_v52 }
 0x2cb   :  { %3606 = vmatpush3.bf16.msra.mxu1 %v3978_v53 }
 0x2cc   :  { %3607 = vmatprep.subr.bf16.mxu1 %v3979_v54  ;;  %v3990_v54 = vld [vmem:[%s4912_s7 + $0x80] sm:$0xff]  }
 0x2cd   :  { %2714 = vmatpush1.bf16.msra.mxu0 %v4681_v44 }
 0x2ce   :  { %2715 = vmatprep.subr.bf16.mxu0 %v4684_v45 }
 0x2cf   :  { %3608 = vmatpush3.bf16.msra.mxu1 %v3980_v56 }
 0x2d0   :  { %3609 = vmatprep.subr.bf16.mxu1 %v3981_v57 }
 0x2d1   :  { %2716 = vmatpush1.bf16.msra.mxu0 %v4689_v46 }
 0x2d2   :  { %2717 = vmatprep.subr.bf16.mxu0 %v4692_v47 }
 0x2d3   :  { %3610 = vmatpush3.bf16.msra.mxu1 %v3982_v58  ;;  %v3992_v58 = vld [vmem:[%s4912_s7 + $0xc8] sm:$0xff]  }
 0x2d4   :  { %3611 = vmatprep.subr.bf16.mxu1 %v3983_v59 }
 0x2d5   :  { %2718 = vmatpush1.bf16.msra.mxu0 %v4697_v31 }
 0x2d6   :  { %2719 = vmatprep.subr.bf16.mxu0 %v4700_v55 }
 0x2d7   :  { %3612 = vmatpush3.bf16.msra.mxu1 %v3984_v60  ;;  %v3993_v60 = vld [vmem:[%s4912_s7 + $0x88] sm:$0xff]  }
 0x2d8   :  { %3613 = vmatprep.subr.bf16.mxu1 %v3985_v63  ;;  %v3994_v63 = vld [vmem:[%s4912_s7 + $0xd0] sm:$0xff]  }
 0x2d9   :  { %2720 = vmatpush1.bf16.msra.mxu0 %v3970_v32 }
 0x2db   :  { %3614 = vmatpush3.bf16.msra.mxu1 %v3986_v1  ;;  %v3995_v1 = vld [vmem:[%s4912_s7 + $0x90] sm:$0xff]  }
 0x2dc   :  { %2738 = vmatmul.mubr.bf16.vlgmr.msra.gmra.mrb[24].mxu0 %v2608_v19  ;;  %3615 = vmatprep.subr.bf16.mxu1 %v3987_v3  ;;  %v3996_v3 = vld [vmem:[%s4912_s7 + $0xd8] sm:$0xff]  }
 0x2df   :  { %3616 = vmatpush3.bf16.msra.mxu1 %v3988_v4  ;;  %v3997_v4 = vld [vmem:[%s4912_s7 + $0x98] sm:$0xff]  }
 0x2e0   :  { %3623 = vmatprep.subr.bf16.mxu1 %v3989_v6  ;;  %v3998_v6 = vld [vmem:[%s4912_s7 + $0xe0] sm:$0xff]  }
 0x375   :  { %v1382_v27 = vpop.f32.mrb[12].mxu1 }
 0x376   :  { %v3706_v29 = vadd.f32 %v1382_v27, %v814_v10  ;;  %v1384_v33 = vpop.f32.mrb[13].mxu1  ;;  %v4000_v10 = vld [vmem:[%s4912_s7 + $0xe8] sm:$0xff]   ;;  %v4004_v27 = vld [vmem:[%s4912_s7 + $0xf8] sm:$0xff]  }
 0x377   :  { %v3707_v34 = vadd.f32 %v1384_v33, %v818_v13  ;;  %v1386_v35 = vpop.f32.mrb[14].mxu1  ;;  %v4001_v13 = vld [vmem:[%s4912_s7 + $0xa8] sm:$0xff]  }
 0x378   :  { %v1387_v36 = vpop.f32.mrb[15].mxu1  ;;  %v4007_v35 = vld [vmem:[%s4914_s9 + $0x8] sm:$0xff]  }
 0x379   :  { %v1391_v2 = vmax.f32 %v3706_v29, %v3707_v34  ;;  %v4005_v29 = vld [vmem:[%s4912_s7 + $0xb8] sm:$0xff]   ;;  %v4006_v34 = vld [vmem:[%s4914_s9] sm:$0xff]   ;;  %v4008_v36 = vld [vmem:[%s4914_s9 + $0x10] sm:$0xff]  }
 0x37b   :  { %v1393_v5 = vrot.slane %v1391_v2, 1 }
 0x37d   :  { %v1395_v9 = vmax.f32 %v1391_v2, %v1393_v5  ;;  %v3192_v2 = vsel %vm3190_vm5, %v4009_v38, 0 }
 0x37f   :  { %v1396_v11 = vmax.f32 %v1395_v9, 0.0 }
 0x381   :  { %1397 = vst [vmem:[#allocation3] sm:$0x1] %v1396_v11  ;;  %v1405_v12 = vrot.slane %v1396_v11, %v1404_v7  ;;  %v1409_v16 = vcombine.high %v1396_v11, %v1396_v11 }
 0x383   :  { %v1406_v25 = vcombine.high %v1405_v12, %v1405_v12  ;;  %v1416_v26 = vrot.slane %v1409_v16, %v1404_v7  ;;  %3398 = vst.sshfl [vmem:[#allocation3 + $0x4] sm:$0x1 pattern:$0x76325410] %v1409_v16  ;;  %v3550_v16 = vld [vmem:[%s4913_s8] ss:$0 sm:$0xff] }
 0x384   :  { %s4069_s8 = smov [#allocation7]  }
 0x385   :  { %1408 = vst [vmem:[#allocation3 + $0x2] sm:$0x1] %v1406_v25  ;;  %v1419_v28 = vcombine.high %v1416_v26, %v1416_v26 }
 0x387   :  { %1421 = vst [vmem:[#allocation3 + $0x6] sm:$0x1] %v1419_v28 }
 0x395   :  { %v2164_v37 = vpop.f32.mrb[16].mxu1 }
 0x396   :  { %v2166_v39 = vpop.f32.mrb[17].mxu1  ;;  %v2182_v44 = vadd.f32 %v2175_v49, %v2164_v37  ;;  %v3583_v49 = vld [vmem:[%s4915_s10] ss:$0 sm:$0xff]  ;;  %s3254_s10 = sshll.u32 %s4069_s8, 4  ;;  %s3255_s10 = int_to_ptr.vmem [resolvable:$true] %s3254_s10 }
 0x397   :  { %v2168_v40 = vpop.f32.mrb[18].mxu1  ;;  %v2183_v45 = vadd.f32 %v2179_v42, %v2166_v39  ;;  %s4036_s29 = scalar_lea.vmem %s3255_s10, 32  ;;  %p4041_p9 = scmp.lt.s32.totalorder %s3255_s10, %s3255_s10 }
 0x398   :  { %v2169_v41 = vpop.f32.mrb[19].mxu1  ;;  %p4037_p8 = scmp.ne.s32.totalorder %s3255_s10, %s4036_s29  ;;  %p4042_p10 = scmp.lt.s32.totalorder %s4036_s29, %s4036_s29 }
 0x39a   :  { %p4043_p11 = por %p4042_p10, %p4041_p9 }
 0x39c   :  { %p4044_p12 = pnand %p4043_p11, %p4037_p8 }
 0x3af   :  { %v2739_v46 = vpop.f32.mrb[24].mxu0 }
 0x3b0   :  { %v3715_v47 = vadd.f32 %v2739_v46, %v2182_v44  ;;  %v2741_v48 = vpop.f32.mrb[25].mxu0 }
 0x3b1   :  { %v3717_v31 = vadd.f32 %v2741_v48, %v2183_v45  ;;  %v2743_v55 = vpop.f32.mrb[26].mxu0 }
 0x3b2   :  { %v2744_v61 = vpop.f32.mrb[27].mxu0 }
 0x3b3   :  { %v2748_v32 = vmax.f32 %v3715_v47, %v3717_v31 }
 0x3b5   :  { %v2750_v62 = vrot.slane %v2748_v32, 1 }
 0x3b7   :  { %v2752_v15 = vmax.f32 %v2748_v32, %v2750_v62 }
 0x3b9   :  { %v2753_v17 = vmax.f32 %v2752_v15, 0.0 }
 0x3bb   :  { %2754 = vst [vmem:[#allocation3 + $0x1] sm:$0x1] %v2753_v17  ;;  %v2762_v18 = vrot.slane %v2753_v17, %v1404_v7  ;;  %v2766_v0 = vcombine.high %v2753_v17, %v2753_v17 }
 0x3bd   :  { %v2763_v19 = vcombine.high %v2762_v18, %v2762_v18  ;;  %v2773_v20 = vrot.slane %v2766_v0, %v1404_v7  ;;  %3549 = vst.sshfl [vmem:[#allocation3 + $0x5] sm:$0x1 pattern:$0x76325410] %v2766_v0 }
 0x3bf   :  { %2765 = vst [vmem:[#allocation3 + $0x3] sm:$0x1] %v2763_v19  ;;  %v2776_v50 = vcombine.high %v2773_v20, %v2773_v20 }
 0x3c1   :  { %2778 = vst [vmem:[#allocation3 + $0x7] sm:$0x1] %v2776_v50 }
 0x3c8   :  { %v2779_v52 = vld [vmem:[#allocation3] sm:$0xff] }
 0x3c9   :  { %v2788_v21 = vrot.slane %v2779_v52, %v1404_v7  ;;  %v2781_v22 = vcombine.high %v2779_v52, %v2779_v52 }
 0x3cb   :  { %v2796_v23 = vcombine.high %v2788_v21, %v2788_v21  ;;  %v2795_v51 = vrot.slane %v2781_v22, %v1404_v7  ;;  %v2802_v57 = vpack.c.bf16 %v2788_v21, %v2788_v21 }
 0x3cd   :  { %v2803_v53 = vpack.c.bf16 %v2796_v23, %v2796_v23  ;;  %v2797_v56 = vcombine.high %v2795_v51, %v2795_v51  ;;  %v2804_v33 = vpack.c.bf16 %v2795_v51, %v2795_v51 }
 0x3cf   :  { %3101 = vmatprep.mubr.bf16.mxu1 %v2803_v53  ;;  %v2805_v59 = vpack.c.bf16 %v2797_v56, %v2797_v56 }
 0x3d0   :  { %3102 = vmatmul.mubr.bf16.vlgmr.msra.gmra.mrb[20].mxu1 %v2802_v57 }
 0x3d1   :  { %3624 = vmatpush3.bf16.msra.mxu1 %v3990_v54  ;;  %3141 = vmatprep.mubr.bf16.mxu1 %v2805_v59 }
 0x3d2   :  { %3625 = vmatprep.subr.bf16.mxu1 %v3992_v58 }
 0x3d5   :  { %3626 = vmatpush3.bf16.msra.mxu1 %v3993_v60 }
 0x3d6   :  { %3627 = vmatprep.subr.bf16.mxu1 %v3994_v63 }
 0x3d9   :  { %3628 = vmatpush3.bf16.msra.mxu1 %v3995_v1 }
 0x3da   :  { %3629 = vmatprep.subr.bf16.mxu1 %v3996_v3 }
 0x3dd   :  { %3630 = vmatpush3.bf16.msra.mxu1 %v3997_v4 }
 0x3de   :  { %3631 = vmatprep.subr.bf16.mxu1 %v3998_v6 }
 0x3e1   :  { %3632 = vmatpush3.bf16.msra.mxu1 %v3999_v8 }
 0x3e2   :  { %3633 = vmatprep.subr.bf16.mxu1 %v4000_v10 }
 0x3e5   :  { %3634 = vmatpush3.bf16.msra.mxu1 %v4001_v13 }
 0x3e6   :  { %3635 = vmatprep.subr.bf16.mxu1 %v4002_v14 }
 0x3e9   :  { %3636 = vmatpush3.bf16.msra.mxu1 %v4003_v24 }
 0x3ea   :  { %3637 = vmatprep.subr.bf16.mxu1 %v4004_v27 }
 0x3ed   :  { %3638 = vmatpush3.bf16.msra.mxu1 %v4005_v29 }
 0x3ee   :  { %3682 = vmatprep.subr.bf16.mxu1 %v4066_v43 }
 0x3f0   :  { %3142 = vmatmul.mubr.bf16.vlgmr.msra.gmra.mrb[24].mxu1 %v2804_v33 }
 0x3f1   :  { %3690 = vmatprep.mubr.msk.bf16.mxu1 %vm4067_vm2, %v4066_v43  ;;  %3683 = vmatpush3.bf16.msra.mxu1 %v4006_v34 }
 0x3f2   :  { %3684 = vmatprep.subr.bf16.mxu1 %v4066_v43 }
 0x3f5   :  { %3685 = vmatpush3.bf16.msra.mxu1 %v4007_v35 }
 0x3f6   :  { %3686 = vmatprep.subr.bf16.mxu1 %v4066_v43 }
 0x3f9   :  { %3687 = vmatpush3.bf16.msra.mxu1 %v4008_v36 }
 0x3fa   :  { %3688 = vmatprep.subr.bf16.mxu1 %v4066_v43 }
 0x3fd   :  { %3689 = vmatpush3.bf16.msra.mxu1 %v3192_v2 }
 0x4a3   :  { %v3617_v5 = vpop.f32.mrb[20].mxu1 }
 0x4a4   :  { %v3618_v7 = vpop.f32.mrb[21].mxu1 }
 0x4a5   :  { %v3619_v9 = vadd.f32 %v3618_v7, %v3617_v5  ;;  %v3620_v11 = vpop.f32.mrb[22].mxu1 }
 0x4a6   :  { %v3621_v12 = vpop.f32.mrb[23].mxu1 }
 0x4a7   :  { %v3104_v28 = vadd.f32 %v3619_v9, %v3550_v16 }
 0x4c3   :  { %v3639_v25 = vpop.f32.mrb[24].mxu1 }
 0x4c4   :  { %v3640_v26 = vpop.f32.mrb[25].mxu1 }
 0x4c5   :  { %v3641_v43 = vadd.f32 %v3640_v26, %v3639_v25  ;;  %v3642_v37 = vpop.f32.mrb[26].mxu1 }
 0x4c6   :  { %v3643_v39 = vpop.f32.mrb[27].mxu1 }
 0x4c7   :  { %v3144_v40 = vadd.f32 %v3641_v43, %v3104_v28 }
 0x4c9   :  { %v3149_v41 = vmax.f32 %v3144_v40, 0.0 }
 0x4cb   :  { %v3150_v30 = vpack.c.bf16 %v3149_v41, %v3149_v41 }
 0x4cd   :  { %3691 = vmatmul.mubr.msk.bf16.vlgmr.msra.gmra.mrb[28].mxu1 %vm3186_vm6, %v3150_v30 }
 0x5a0   :  { %v3228_v42 = vpop.f32.mrb[28].mxu1 }
 0x5a1   :  { %v3229_v44 = vadd.f32 %v3583_v49, %v3228_v42  ;;  %v3692_v45 = vpop.f32.mrb[29].mxu1 }
 0x5a2   :  { %v3231_v46 = vpop.f32.mrb[30].mxu1 }
 0x5a3   :  { %v3693_v47 = vpop.f32.mrb[31].mxu1  ;;  %v3235_v48 = vsel %vm3234_vm7, %v3229_v44, -inf }
 0x5a4   :  { %3236 = vmax.xlane.f32.xlu0 %v3235_v48 }
 0x631   :  { %v3237_v31 = vpop.xlane.xlu0 %3236 }
 0x632   :  { %v3238_v55 = vsub.f32 %v3229_v44, %v3237_v31 }
 0x634   :  { %v3239_v61 = vmul.f32 1.442695, %v3238_v55 }
 0x636   :  { %4010 = vpow2.f32 %v3239_v61 }
 0x640   :  { %v4011_v32 = vpop.eup %4010 }
 0x641   :  { %v3241_v62 = vsel %vm3234_vm7, %v4011_v32, 0.0 }
 0x642   :  { %3242 = vadd.xlane.f32.xlu0 %v3241_v62 }
 0x6cf   :  { %v3243_v15 = vpop.xlane.xlu0 %3242 }
 0x6d0   :  { %4012 = vlog2.f32 %v3243_v15 }
 0x6da   :  { %v4013_v17 = vpop.eup %4012 }
 0x6db   :  { %v3245_v18 = vmul.f32 0.6931472, %v4013_v17 }
 0x6dd   :  { %v3246_v0 = vsub.f32 %v3238_v55, %v3245_v18 }
 0x6df   :  { %3247 = vst.msk [vmem:[#allocation7] sm:$0x3] %vm3234_vm7, %v3246_v0 }
 0x6e0   :  { %4047 = shalt.err (!%p4044_p12)
}
 0x6e1   :  { %s4048_s13 = scalar_lea.hbm %s4916_s11, 32 }
 0x6e2   :  { %p4049_p13 = scmp.ne.s32.totalorder %s4916_s11, %s4048_s13  ;;  %p4052_p0 = scmp.lt.u32.totalorder %s4048_s13, %s4916_s11 }
 0x6e4   :  { %p4054_p1 = pnand %p4052_p0, %p4049_p13 }
 0x6e6   :  { %4057 = shalt.err (!%p4054_p1)
}
 0x6e7   :  { %3257 = dma.vmem_to_hbm [thread:$0]  %s3255_s10, 32, %s4916_s11, [#allocation6]  }
 0x6e8   :  { %4060 = dma.done.wait [#allocation6], 32  }
 0x6e9   :  { %4061 = vsyncadd [#allocation6], 4294967264 }
 0x6ea   :  { %3261 = vsyncpa [#allocation5], 1 }
 0x6eb   :  { %3262 = vsyncpa [#allocation6], 1 }

</bundles_post_ra>
